<compile_context>
chip_gen: v7x
topology: tpu7x:2x2x1
jax: 0.10.0
libtpu: 0.0.40
codegen_flags: <defaults>
</compile_context>

<pallas_src>
import jax
import jax.numpy as jnp
from jax import lax
from jax.experimental import pallas as pl
from jax.experimental.pallas import tpu as pltpu


# -----------------------------------------------------------------------------
# Fused per-branch kernel:
#   1x1 conv -> (Dropout2d = id) -> MaxPool -> ReLU -> Linear -> GELU ->
#   (Dropout = id) -> Linear
# -----------------------------------------------------------------------------
def fused_branch_kernel(xw_ref, wc_ref, bc_ref, w1_ref, b1_ref, w2_ref, b2_ref,
                        o_ref):
    # xw_ref: (1, pp, cin, TB, hw)  VMEM, f32 -- window-position / channel major,
    #                                             (batch-tile, window-index) minor
    # wc_ref: (cin, cout) SMEM f32 scalars ; bc_ref: (cout,) SMEM f32 scalars
    # w1_ref: (hw, hid) bf16 ; b1_ref: (1, hid) f32
    # w2_ref: (hid, nout) bf16 ; b2_ref: (1, nout) f32
    # o_ref : (1, cout*TB, nout) f32   (row index = co*TB + tb)
    _, pp, cin, tb, hw = xw_ref.shape
    cout = wc_ref.shape[1]

    # --- 1x1 conv (scalar-from-SMEM x slab FMAs) fused with max pooling -------
    pooled = [None] * cout
    for k in range(pp):                                # static unroll: window pos
        xkc = [xw_ref[0, k, c] for c in range(cin)]    # cin loads of (TB, hw)
        for co in range(cout):
            acc = xkc[0] * wc_ref[0, co]
            for c in range(1, cin):
                acc = acc + xkc[c] * wc_ref[c, co]
            pooled[co] = acc if pooled[co] is None else jnp.maximum(pooled[co], acc)

    # bias (per-channel -> commutes with max) + ReLU; fold (cout, TB) -> M rows
    z = jnp.concatenate(
        [jnp.maximum(pooled[co] + bc_ref[co], 0.0) for co in range(cout)],
        axis=0)                                        # (cout*TB, hw), f32

    # --- MLP: Linear -> exact (erf) GELU -> Linear ---------------------------
    # bf16 operands into the MXU, f32 accumulation / bias / activation.
    h = (jnp.dot(z.astype(jnp.bfloat16), w1_ref[...],
                 preferred_element_type=jnp.float32) + b1_ref[...])   # (M, hid)
    h = 0.5 * h * (1.0 + lax.erf(h * 0.7071067811865475))             # exact GELU
    o = (jnp.dot(h.astype(jnp.bfloat16), w2_ref[...],
                 preferred_element_type=jnp.float32) + b2_ref[...])   # (M, nout)
    o_ref[0] = o


def fused_branch(xw, wc, bc, w1_bf16, b1, w2_bf16, b2):
    # xw: (nTB, pp, cin, TB, hw) f32 ; returns (nTB, cout*TB, nout) f32
    nTB, pp, cin, TB, hw = xw.shape
    cout = wc.shape[1]
    hid = w1_bf16.shape[1]
    nout = w2_bf16.shape[1]
    M = cout * TB
    return pl.pallas_call(
        fused_branch_kernel,
        out_shape=jax.ShapeDtypeStruct((nTB, M, nout), jnp.float32),
        grid_spec=pltpu.PrefetchScalarGridSpec(
            num_scalar_prefetch=0,
            grid=(nTB,),
            in_specs=[
                pl.BlockSpec((1, pp, cin, TB, hw), lambda g: (g, 0, 0, 0, 0)),
                pl.BlockSpec(memory_space=pltpu.MemorySpace.SMEM),   # wc scalars
                pl.BlockSpec(memory_space=pltpu.MemorySpace.SMEM),   # bc scalars
                pl.BlockSpec((hw, hid), lambda g: (0, 0)),           # w1 (bf16)
                pl.BlockSpec((1, hid), lambda g: (0, 0)),            # b1
                pl.BlockSpec((hid, nout), lambda g: (0, 0)),         # w2 (bf16)
                pl.BlockSpec((1, nout), lambda g: (0, 0)),           # b2
            ],
            out_specs=pl.BlockSpec((1, M, nout), lambda g: (g, 0, 0)),
        ),
        compiler_params=pltpu.CompilerParams(
            dimension_semantics=("parallel",)),
    )(xw, wc, bc, w1_bf16, b1, w2_bf16, b2)


def _pick_tb(batch, cout, target_rows=256):
    """Batch-tile size: fill the MXU M axis (TB*cout -> target_rows) but keep
    >= 2 grid steps when the batch allows it (v7x has 2 TensorCores)."""
    tb_fill = max(1, target_rows // max(cout, 1))
    tb_two_steps = max(1, -(-batch // 2))          # ceil(B/2)
    return max(1, min(batch, tb_fill, tb_two_steps))


# -----------------------------------------------------------------------------
# ExtractionBlock forward: one fused pallas_call per pool size
# -----------------------------------------------------------------------------
def extraction_block_forward(x, params, pool_sizes):
    # x: (B, C_in, H, W) -- NCHW, like PyTorch
    B, cin, H, W = x.shape
    outs = []
    for p, (wc, bc, w1, b1, w2, b2) in zip(pool_sizes, params):
        assert H % p == 0 and W % p == 0, "spatial dims must be divisible by pool size"
        cout = wc.shape[1]
        nout = w2.shape[1]
        Hp, Wp = H // p, W // p
        hw = Hp * Wp
        pp = p * p

        TB = _pick_tb(B, cout)
        nTB = -(-B // TB)
        Bp = nTB * TB
        xp = x if Bp == B else jnp.pad(x, ((0, Bp - B), (0, 0), (0, 0), (0, 0)))

        # One small permutation per branch:
        #   (B, cin, H, W) -> (nTB, p*p, cin, TB, Hp*Wp)
        # window-position major so pooling is a max over the leading pp axis;
        # (TB, hw) trailing dims feed the matmul M=(cout*TB) rows with no
        # in-kernel relayout.
        xw = (xp.reshape(nTB, TB, cin, Hp, p, Wp, p)
                .transpose(0, 4, 6, 2, 1, 3, 5)
                .reshape(nTB, pp, cin, TB, hw))

        o = fused_branch(xw, wc, bc.reshape(-1),
                         w1.astype(jnp.bfloat16), b1,
                         w2.astype(jnp.bfloat16), b2)     # (nTB, cout*TB, nout)
        # rows are co-major inside each batch tile -> reorder to (b, co) and flatten
        o = (o.reshape(nTB, cout, TB, nout)
               .transpose(0, 2, 1, 3)
               .reshape(Bp, cout * nout))[:B]
        outs.append(o)
    return jnp.concatenate(outs, axis=1)


# -----------------------------------------------------------------------------
# Pure-JAX references for verification
# -----------------------------------------------------------------------------
def extraction_block_reference(x, params, pool_sizes, matmul_dtype=jnp.float32):
    B, cin, H, W = x.shape
    outs = []
    for p, (wc, bc, w1, b1, w2, b2) in zip(pool_sizes, params):
        y = jnp.einsum("bchw,co->bohw", x, wc,
                       precision=lax.Precision.HIGHEST) + bc.reshape(1, -1, 1, 1)
        Hp, Wp = H // p, W // p
        y = y.reshape(B, -1, Hp, p, Wp, p).max(axis=(3, 5))
        y = jnp.maximum(y, 0.0).reshape(B, -1, Hp * Wp)
        h = jnp.dot(y.astype(matmul_dtype), w1.astype(matmul_dtype),
                    precision=lax.Precision.HIGHEST,
                    preferred_element_type=jnp.float32) + b1
        h = 0.5 * h * (1.0 + jax.scipy.special.erf(h / jnp.sqrt(2.0)))
        o = jnp.dot(h.astype(matmul_dtype), w2.astype(matmul_dtype),
                    precision=lax.Precision.HIGHEST,
                    preferred_element_type=jnp.float32) + b2
        outs.append(o.reshape(B, -1))
    return jnp.concatenate(outs, axis=1)


# -----------------------------------------------------------------------------
# Deterministic parameter construction (matching module __init__ shapes)
# -----------------------------------------------------------------------------
def make_params(key, in_filters, p_comp, in_img_size, pool_sizes,
                hidden_features=1024, out_features=128):
    cout = in_filters // p_comp
    params = []
    for p in pool_sizes:
        dim = (in_img_size // p) ** 2
        key, k1, k2, k3, k4, k5, k6 = jax.random.split(key, 7)
        # Conv2d(in_filters, cout, 1x1): weight (cout, cin, 1, 1) -> store (cin, cout)
        wc = 0.1 * jax.random.normal(k1, (in_filters, cout), jnp.float32)
        bc = 0.1 * jax.random.normal(k2, (1, cout), jnp.float32)
        # Linear(dim, 1024): weight (1024, dim) -> store (dim, 1024)
        w1 = (1.0 / jnp.sqrt(dim)) * jax.random.normal(
            k3, (dim, hidden_features), jnp.float32)
        b1 = 0.1 * jax.random.normal(k4, (1, hidden_features), jnp.float32)
        # Linear(1024, 128): weight (128, 1024) -> store (1024, 128)
        w2 = (1.0 / jnp.sqrt(hidden_features)) * jax.random.normal(
            k5, (hidden_features, out_features), jnp.float32)
        b2 = 0.1 * jax.random.normal(k6, (1, out_features), jnp.float32)
        params.append((wc, bc, w1, b1, w2, b2))
    return params


if __name__ == "__main__":
    # Small shapes consistent with the module: B=2, in_filters=4, p_comp=2,
    # in_img_size=16, pool_sizes=[2, 4] -> output (2, 2*2*128) = (2, 512)
    B, in_filters, p_comp, in_img_size = 2, 4, 2, 16
    pool_sizes = [2, 4]

    key = jax.random.PRNGKey(0)
    kx, kp = jax.random.split(key)
    x = jax.random.normal(kx, (B, in_filters, in_img_size, in_img_size), jnp.float32)
    params = make_params(kp, in_filters, p_comp, in_img_size, pool_sizes)

    out = jax.block_until_ready(extraction_block_forward(x, params, pool_sizes))

    assert out.shape == (B, (in_filters // p_comp) * 128 * len(pool_sizes)), out.shape

    # Numerics-mirror reference (same bf16 matmul inputs, f32 accumulation)
    ref_bf16 = extraction_block_reference(x, params, pool_sizes,
                                          matmul_dtype=jnp.bfloat16)
    err_mirror = float(jnp.max(jnp.abs(out - ref_bf16)))
    assert jnp.allclose(out, ref_bf16, atol=5e-3, rtol=5e-3), err_mirror

    # Loose sanity check against a full-f32 reference (bf16 weight trade-off)
    ref_f32 = extraction_block_reference(x, params, pool_sizes,
                                         matmul_dtype=jnp.float32)
    err_f32 = float(jnp.max(jnp.abs(out - ref_f32)))
    assert jnp.allclose(out, ref_f32, atol=5e-2, rtol=5e-2), err_f32

    print("KERNEL_OK")
</pallas_src>

<mosaic_0001>
module attributes {stable_mosaic.version = 11 : i64} {
  func.func @fused_branch_kernel(%arg0: i32, %arg1: memref<1x4x4x1x64xf32, #tpu.memory_space<vmem>>, %arg2: memref<4x2xf32, #tpu.memory_space<smem>>, %arg3: memref<2xf32, #tpu.memory_space<smem>>, %arg4: memref<64x1024xbf16, #tpu.memory_space<vmem>>, %arg5: memref<1x1024xf32, #tpu.memory_space<vmem>>, %arg6: memref<1024x128xbf16, #tpu.memory_space<vmem>>, %arg7: memref<1x128xf32, #tpu.memory_space<vmem>>, %arg8: memref<1x2x128xf32, #tpu.memory_space<vmem>>) attributes {dimension_semantics = [#tpu.dimension_semantics<parallel>], iteration_bounds = array<i64: 2>, scalar_prefetch = 0 : i64, scratch_operands = 0 : i64, tpu.core_type = #tpu.core_type<tc>, window_params = [{transform_indices = @transform_0, window_bounds = array<i64: 1, 4, 4, 1, 64>}, {transform_indices = @transform_1, window_bounds = array<i64: 4, 2>}, {transform_indices = @transform_2, window_bounds = array<i64: 2>}, {pipeline_mode = #tpu.pipeline_mode<synchronous>, transform_indices = @transform_3, window_bounds = array<i64: 64, 1024>}, {pipeline_mode = #tpu.pipeline_mode<synchronous>, transform_indices = @transform_4, window_bounds = array<i64: 1, 1024>}, {pipeline_mode = #tpu.pipeline_mode<synchronous>, transform_indices = @transform_5, window_bounds = array<i64: 1024, 128>}, {pipeline_mode = #tpu.pipeline_mode<synchronous>, transform_indices = @transform_6, window_bounds = array<i64: 1, 128>}, {transform_indices = @transform_7, window_bounds = array<i64: 1, 2, 128>}]} {
    %c0 = arith.constant 0 : index
    %c0_0 = arith.constant 0 : index
    %c0_1 = arith.constant 0 : index
    %c0_2 = arith.constant 0 : index
    %c0_3 = arith.constant 0 : index
    %0 = vector.load %arg1[%c0, %c0_0, %c0_1, %c0_2, %c0_3] : memref<1x4x4x1x64xf32, #tpu.memory_space<vmem>>, vector<1x1x1x1x64xf32>
    %1 = vector.shape_cast %0 : vector<1x1x1x1x64xf32> to vector<1x64xf32>
    %c0_4 = arith.constant 0 : index
    %c0_5 = arith.constant 0 : index
    %c1 = arith.constant 1 : index
    %c0_6 = arith.constant 0 : index
    %c0_7 = arith.constant 0 : index
    %2 = vector.load %arg1[%c0_4, %c0_5, %c1, %c0_6, %c0_7] : memref<1x4x4x1x64xf32, #tpu.memory_space<vmem>>, vector<1x1x1x1x64xf32>
    %3 = vector.shape_cast %2 : vector<1x1x1x1x64xf32> to vector<1x64xf32>
    %c0_8 = arith.constant 0 : index
    %c0_9 = arith.constant 0 : index
    %c2 = arith.constant 2 : index
    %c0_10 = arith.constant 0 : index
    %c0_11 = arith.constant 0 : index
    %4 = vector.load %arg1[%c0_8, %c0_9, %c2, %c0_10, %c0_11] : memref<1x4x4x1x64xf32, #tpu.memory_space<vmem>>, vector<1x1x1x1x64xf32>
    %5 = vector.shape_cast %4 : vector<1x1x1x1x64xf32> to vector<1x64xf32>
    %c0_12 = arith.constant 0 : index
    %c0_13 = arith.constant 0 : index
    %c3 = arith.constant 3 : index
    %c0_14 = arith.constant 0 : index
    %c0_15 = arith.constant 0 : index
    %6 = vector.load %arg1[%c0_12, %c0_13, %c3, %c0_14, %c0_15] : memref<1x4x4x1x64xf32, #tpu.memory_space<vmem>>, vector<1x1x1x1x64xf32>
    %7 = vector.shape_cast %6 : vector<1x1x1x1x64xf32> to vector<1x64xf32>
    %c0_16 = arith.constant 0 : index
    %c0_17 = arith.constant 0 : index
    %8 = memref.load %arg2[%c0_16, %c0_17] : memref<4x2xf32, #tpu.memory_space<smem>>
    %9 = vector.broadcast %8 : f32 to vector<1x64xf32>
    %10 = arith.mulf %1, %9 : vector<1x64xf32>
    %c1_18 = arith.constant 1 : index
    %c0_19 = arith.constant 0 : index
    %11 = memref.load %arg2[%c1_18, %c0_19] : memref<4x2xf32, #tpu.memory_space<smem>>
    %12 = vector.broadcast %11 : f32 to vector<1x64xf32>
    %13 = arith.mulf %3, %12 : vector<1x64xf32>
    %14 = arith.addf %10, %13 : vector<1x64xf32>
    %c2_20 = arith.constant 2 : index
    %c0_21 = arith.constant 0 : index
    %15 = memref.load %arg2[%c2_20, %c0_21] : memref<4x2xf32, #tpu.memory_space<smem>>
    %16 = vector.broadcast %15 : f32 to vector<1x64xf32>
    %17 = arith.mulf %5, %16 : vector<1x64xf32>
    %18 = arith.addf %14, %17 : vector<1x64xf32>
    %c3_22 = arith.constant 3 : index
    %c0_23 = arith.constant 0 : index
    %19 = memref.load %arg2[%c3_22, %c0_23] : memref<4x2xf32, #tpu.memory_space<smem>>
    %20 = vector.broadcast %19 : f32 to vector<1x64xf32>
    %21 = arith.mulf %7, %20 : vector<1x64xf32>
    %22 = arith.addf %18, %21 : vector<1x64xf32>
    %c0_24 = arith.constant 0 : index
    %c1_25 = arith.constant 1 : index
    %23 = memref.load %arg2[%c0_24, %c1_25] : memref<4x2xf32, #tpu.memory_space<smem>>
    %24 = vector.broadcast %23 : f32 to vector<1x64xf32>
    %25 = arith.mulf %1, %24 : vector<1x64xf32>
    %c1_26 = arith.constant 1 : index
    %c1_27 = arith.constant 1 : index
    %26 = memref.load %arg2[%c1_26, %c1_27] : memref<4x2xf32, #tpu.memory_space<smem>>
    %27 = vector.broadcast %26 : f32 to vector<1x64xf32>
    %28 = arith.mulf %3, %27 : vector<1x64xf32>
    %29 = arith.addf %25, %28 : vector<1x64xf32>
    %c2_28 = arith.constant 2 : index
    %c1_29 = arith.constant 1 : index
    %30 = memref.load %arg2[%c2_28, %c1_29] : memref<4x2xf32, #tpu.memory_space<smem>>
    %31 = vector.broadcast %30 : f32 to vector<1x64xf32>
    %32 = arith.mulf %5, %31 : vector<1x64xf32>
    %33 = arith.addf %29, %32 : vector<1x64xf32>
    %c3_30 = arith.constant 3 : index
    %c1_31 = arith.constant 1 : index
    %34 = memref.load %arg2[%c3_30, %c1_31] : memref<4x2xf32, #tpu.memory_space<smem>>
    %35 = vector.broadcast %34 : f32 to vector<1x64xf32>
    %36 = arith.mulf %7, %35 : vector<1x64xf32>
    %37 = arith.addf %33, %36 : vector<1x64xf32>
    %c0_32 = arith.constant 0 : index
    %c1_33 = arith.constant 1 : index
    %c0_34 = arith.constant 0 : index
    %c0_35 = arith.constant 0 : index
    %c0_36 = arith.constant 0 : index
    %38 = vector.load %arg1[%c0_32, %c1_33, %c0_34, %c0_35, %c0_36] : memref<1x4x4x1x64xf32, #tpu.memory_space<vmem>>, vector<1x1x1x1x64xf32>
    %39 = vector.shape_cast %38 : vector<1x1x1x1x64xf32> to vector<1x64xf32>
    %c0_37 = arith.constant 0 : index
    %c1_38 = arith.constant 1 : index
    %c1_39 = arith.constant 1 : index
    %c0_40 = arith.constant 0 : index
    %c0_41 = arith.constant 0 : index
    %40 = vector.load %arg1[%c0_37, %c1_38, %c1_39, %c0_40, %c0_41] : memref<1x4x4x1x64xf32, #tpu.memory_space<vmem>>, vector<1x1x1x1x64xf32>
    %41 = vector.shape_cast %40 : vector<1x1x1x1x64xf32> to vector<1x64xf32>
    %c0_42 = arith.constant 0 : index
    %c1_43 = arith.constant 1 : index
    %c2_44 = arith.constant 2 : index
    %c0_45 = arith.constant 0 : index
    %c0_46 = arith.constant 0 : index
    %42 = vector.load %arg1[%c0_42, %c1_43, %c2_44, %c0_45, %c0_46] : memref<1x4x4x1x64xf32, #tpu.memory_space<vmem>>, vector<1x1x1x1x64xf32>
    %43 = vector.shape_cast %42 : vector<1x1x1x1x64xf32> to vector<1x64xf32>
    %c0_47 = arith.constant 0 : index
    %c1_48 = arith.constant 1 : index
    %c3_49 = arith.constant 3 : index
    %c0_50 = arith.constant 0 : index
    %c0_51 = arith.constant 0 : index
    %44 = vector.load %arg1[%c0_47, %c1_48, %c3_49, %c0_50, %c0_51] : memref<1x4x4x1x64xf32, #tpu.memory_space<vmem>>, vector<1x1x1x1x64xf32>
    %45 = vector.shape_cast %44 : vector<1x1x1x1x64xf32> to vector<1x64xf32>
    %c0_52 = arith.constant 0 : index
    %c0_53 = arith.constant 0 : index
    %46 = memref.load %arg2[%c0_52, %c0_53] : memref<4x2xf32, #tpu.memory_space<smem>>
    %47 = vector.broadcast %46 : f32 to vector<1x64xf32>
    %48 = arith.mulf %39, %47 : vector<1x64xf32>
    %c1_54 = arith.constant 1 : index
    %c0_55 = arith.constant 0 : index
    %49 = memref.load %arg2[%c1_54, %c0_55] : memref<4x2xf32, #tpu.memory_space<smem>>
    %50 = vector.broadcast %49 : f32 to vector<1x64xf32>
    %51 = arith.mulf %41, %50 : vector<1x64xf32>
    %52 = arith.addf %48, %51 : vector<1x64xf32>
    %c2_56 = arith.constant 2 : index
    %c0_57 = arith.constant 0 : index
    %53 = memref.load %arg2[%c2_56, %c0_57] : memref<4x2xf32, #tpu.memory_space<smem>>
    %54 = vector.broadcast %53 : f32 to vector<1x64xf32>
    %55 = arith.mulf %43, %54 : vector<1x64xf32>
    %56 = arith.addf %52, %55 : vector<1x64xf32>
    %c3_58 = arith.constant 3 : index
    %c0_59 = arith.constant 0 : index
    %57 = memref.load %arg2[%c3_58, %c0_59] : memref<4x2xf32, #tpu.memory_space<smem>>
    %58 = vector.broadcast %57 : f32 to vector<1x64xf32>
    %59 = arith.mulf %45, %58 : vector<1x64xf32>
    %60 = arith.addf %56, %59 : vector<1x64xf32>
    %61 = arith.maximumf %22, %60 : vector<1x64xf32>
    %c0_60 = arith.constant 0 : index
    %c1_61 = arith.constant 1 : index
    %62 = memref.load %arg2[%c0_60, %c1_61] : memref<4x2xf32, #tpu.memory_space<smem>>
    %63 = vector.broadcast %62 : f32 to vector<1x64xf32>
    %64 = arith.mulf %39, %63 : vector<1x64xf32>
    %c1_62 = arith.constant 1 : index
    %c1_63 = arith.constant 1 : index
    %65 = memref.load %arg2[%c1_62, %c1_63] : memref<4x2xf32, #tpu.memory_space<smem>>
    %66 = vector.broadcast %65 : f32 to vector<1x64xf32>
    %67 = arith.mulf %41, %66 : vector<1x64xf32>
    %68 = arith.addf %64, %67 : vector<1x64xf32>
    %c2_64 = arith.constant 2 : index
    %c1_65 = arith.constant 1 : index
    %69 = memref.load %arg2[%c2_64, %c1_65] : memref<4x2xf32, #tpu.memory_space<smem>>
    %70 = vector.broadcast %69 : f32 to vector<1x64xf32>
    %71 = arith.mulf %43, %70 : vector<1x64xf32>
    %72 = arith.addf %68, %71 : vector<1x64xf32>
    %c3_66 = arith.constant 3 : index
    %c1_67 = arith.constant 1 : index
    %73 = memref.load %arg2[%c3_66, %c1_67] : memref<4x2xf32, #tpu.memory_space<smem>>
    %74 = vector.broadcast %73 : f32 to vector<1x64xf32>
    %75 = arith.mulf %45, %74 : vector<1x64xf32>
    %76 = arith.addf %72, %75 : vector<1x64xf32>
    %77 = arith.maximumf %37, %76 : vector<1x64xf32>
    %c0_68 = arith.constant 0 : index
    %c2_69 = arith.constant 2 : index
    %c0_70 = arith.constant 0 : index
    %c0_71 = arith.constant 0 : index
    %c0_72 = arith.constant 0 : index
    %78 = vector.load %arg1[%c0_68, %c2_69, %c0_70, %c0_71, %c0_72] : memref<1x4x4x1x64xf32, #tpu.memory_space<vmem>>, vector<1x1x1x1x64xf32>
    %79 = vector.shape_cast %78 : vector<1x1x1x1x64xf32> to vector<1x64xf32>
    %c0_73 = arith.constant 0 : index
    %c2_74 = arith.constant 2 : index
    %c1_75 = arith.constant 1 : index
    %c0_76 = arith.constant 0 : index
    %c0_77 = arith.constant 0 : index
    %80 = vector.load %arg1[%c0_73, %c2_74, %c1_75, %c0_76, %c0_77] : memref<1x4x4x1x64xf32, #tpu.memory_space<vmem>>, vector<1x1x1x1x64xf32>
    %81 = vector.shape_cast %80 : vector<1x1x1x1x64xf32> to vector<1x64xf32>
    %c0_78 = arith.constant 0 : index
    %c2_79 = arith.constant 2 : index
    %c2_80 = arith.constant 2 : index
    %c0_81 = arith.constant 0 : index
    %c0_82 = arith.constant 0 : index
    %82 = vector.load %arg1[%c0_78, %c2_79, %c2_80, %c0_81, %c0_82] : memref<1x4x4x1x64xf32, #tpu.memory_space<vmem>>, vector<1x1x1x1x64xf32>
    %83 = vector.shape_cast %82 : vector<1x1x1x1x64xf32> to vector<1x64xf32>
    %c0_83 = arith.constant 0 : index
    %c2_84 = arith.constant 2 : index
    %c3_85 = arith.constant 3 : index
    %c0_86 = arith.constant 0 : index
    %c0_87 = arith.constant 0 : index
    %84 = vector.load %arg1[%c0_83, %c2_84, %c3_85, %c0_86, %c0_87] : memref<1x4x4x1x64xf32, #tpu.memory_space<vmem>>, vector<1x1x1x1x64xf32>
    %85 = vector.shape_cast %84 : vector<1x1x1x1x64xf32> to vector<1x64xf32>
    %c0_88 = arith.constant 0 : index
    %c0_89 = arith.constant 0 : index
    %86 = memref.load %arg2[%c0_88, %c0_89] : memref<4x2xf32, #tpu.memory_space<smem>>
    %87 = vector.broadcast %86 : f32 to vector<1x64xf32>
    %88 = arith.mulf %79, %87 : vector<1x64xf32>
    %c1_90 = arith.constant 1 : index
    %c0_91 = arith.constant 0 : index
    %89 = memref.load %arg2[%c1_90, %c0_91] : memref<4x2xf32, #tpu.memory_space<smem>>
    %90 = vector.broadcast %89 : f32 to vector<1x64xf32>
    %91 = arith.mulf %81, %90 : vector<1x64xf32>
    %92 = arith.addf %88, %91 : vector<1x64xf32>
    %c2_92 = arith.constant 2 : index
    %c0_93 = arith.constant 0 : index
    %93 = memref.load %arg2[%c2_92, %c0_93] : memref<4x2xf32, #tpu.memory_space<smem>>
    %94 = vector.broadcast %93 : f32 to vector<1x64xf32>
    %95 = arith.mulf %83, %94 : vector<1x64xf32>
    %96 = arith.addf %92, %95 : vector<1x64xf32>
    %c3_94 = arith.constant 3 : index
    %c0_95 = arith.constant 0 : index
    %97 = memref.load %arg2[%c3_94, %c0_95] : memref<4x2xf32, #tpu.memory_space<smem>>
    %98 = vector.broadcast %97 : f32 to vector<1x64xf32>
    %99 = arith.mulf %85, %98 : vector<1x64xf32>
    %100 = arith.addf %96, %99 : vector<1x64xf32>
    %101 = arith.maximumf %61, %100 : vector<1x64xf32>
    %c0_96 = arith.constant 0 : index
    %c1_97 = arith.constant 1 : index
    %102 = memref.load %arg2[%c0_96, %c1_97] : memref<4x2xf32, #tpu.memory_space<smem>>
    %103 = vector.broadcast %102 : f32 to vector<1x64xf32>
    %104 = arith.mulf %79, %103 : vector<1x64xf32>
    %c1_98 = arith.constant 1 : index
    %c1_99 = arith.constant 1 : index
    %105 = memref.load %arg2[%c1_98, %c1_99] : memref<4x2xf32, #tpu.memory_space<smem>>
    %106 = vector.broadcast %105 : f32 to vector<1x64xf32>
    %107 = arith.mulf %81, %106 : vector<1x64xf32>
    %108 = arith.addf %104, %107 : vector<1x64xf32>
    %c2_100 = arith.constant 2 : index
    %c1_101 = arith.constant 1 : index
    %109 = memref.load %arg2[%c2_100, %c1_101] : memref<4x2xf32, #tpu.memory_space<smem>>
    %110 = vector.broadcast %109 : f32 to vector<1x64xf32>
    %111 = arith.mulf %83, %110 : vector<1x64xf32>
    %112 = arith.addf %108, %111 : vector<1x64xf32>
    %c3_102 = arith.constant 3 : index
    %c1_103 = arith.constant 1 : index
    %113 = memref.load %arg2[%c3_102, %c1_103] : memref<4x2xf32, #tpu.memory_space<smem>>
    %114 = vector.broadcast %113 : f32 to vector<1x64xf32>
    %115 = arith.mulf %85, %114 : vector<1x64xf32>
    %116 = arith.addf %112, %115 : vector<1x64xf32>
    %117 = arith.maximumf %77, %116 : vector<1x64xf32>
    %c0_104 = arith.constant 0 : index
    %c3_105 = arith.constant 3 : index
    %c0_106 = arith.constant 0 : index
    %c0_107 = arith.constant 0 : index
    %c0_108 = arith.constant 0 : index
    %118 = vector.load %arg1[%c0_104, %c3_105, %c0_106, %c0_107, %c0_108] : memref<1x4x4x1x64xf32, #tpu.memory_space<vmem>>, vector<1x1x1x1x64xf32>
    %119 = vector.shape_cast %118 : vector<1x1x1x1x64xf32> to vector<1x64xf32>
    %c0_109 = arith.constant 0 : index
    %c3_110 = arith.constant 3 : index
    %c1_111 = arith.constant 1 : index
    %c0_112 = arith.constant 0 : index
    %c0_113 = arith.constant 0 : index
    %120 = vector.load %arg1[%c0_109, %c3_110, %c1_111, %c0_112, %c0_113] : memref<1x4x4x1x64xf32, #tpu.memory_space<vmem>>, vector<1x1x1x1x64xf32>
    %121 = vector.shape_cast %120 : vector<1x1x1x1x64xf32> to vector<1x64xf32>
    %c0_114 = arith.constant 0 : index
    %c3_115 = arith.constant 3 : index
    %c2_116 = arith.constant 2 : index
    %c0_117 = arith.constant 0 : index
    %c0_118 = arith.constant 0 : index
    %122 = vector.load %arg1[%c0_114, %c3_115, %c2_116, %c0_117, %c0_118] : memref<1x4x4x1x64xf32, #tpu.memory_space<vmem>>, vector<1x1x1x1x64xf32>
    %123 = vector.shape_cast %122 : vector<1x1x1x1x64xf32> to vector<1x64xf32>
    %c0_119 = arith.constant 0 : index
    %c3_120 = arith.constant 3 : index
    %c3_121 = arith.constant 3 : index
    %c0_122 = arith.constant 0 : index
    %c0_123 = arith.constant 0 : index
    %124 = vector.load %arg1[%c0_119, %c3_120, %c3_121, %c0_122, %c0_123] : memref<1x4x4x1x64xf32, #tpu.memory_space<vmem>>, vector<1x1x1x1x64xf32>
    %125 = vector.shape_cast %124 : vector<1x1x1x1x64xf32> to vector<1x64xf32>
    %c0_124 = arith.constant 0 : index
    %c0_125 = arith.constant 0 : index
    %126 = memref.load %arg2[%c0_124, %c0_125] : memref<4x2xf32, #tpu.memory_space<smem>>
    %127 = vector.broadcast %126 : f32 to vector<1x64xf32>
    %128 = arith.mulf %119, %127 : vector<1x64xf32>
    %c1_126 = arith.constant 1 : index
    %c0_127 = arith.constant 0 : index
    %129 = memref.load %arg2[%c1_126, %c0_127] : memref<4x2xf32, #tpu.memory_space<smem>>
    %130 = vector.broadcast %129 : f32 to vector<1x64xf32>
    %131 = arith.mulf %121, %130 : vector<1x64xf32>
    %132 = arith.addf %128, %131 : vector<1x64xf32>
    %c2_128 = arith.constant 2 : index
    %c0_129 = arith.constant 0 : index
    %133 = memref.load %arg2[%c2_128, %c0_129] : memref<4x2xf32, #tpu.memory_space<smem>>
    %134 = vector.broadcast %133 : f32 to vector<1x64xf32>
    %135 = arith.mulf %123, %134 : vector<1x64xf32>
    %136 = arith.addf %132, %135 : vector<1x64xf32>
    %c3_130 = arith.constant 3 : index
    %c0_131 = arith.constant 0 : index
    %137 = memref.load %arg2[%c3_130, %c0_131] : memref<4x2xf32, #tpu.memory_space<smem>>
    %138 = vector.broadcast %137 : f32 to vector<1x64xf32>
    %139 = arith.mulf %125, %138 : vector<1x64xf32>
    %140 = arith.addf %136, %139 : vector<1x64xf32>
    %141 = arith.maximumf %101, %140 : vector<1x64xf32>
    %c0_132 = arith.constant 0 : index
    %c1_133 = arith.constant 1 : index
    %142 = memref.load %arg2[%c0_132, %c1_133] : memref<4x2xf32, #tpu.memory_space<smem>>
    %143 = vector.broadcast %142 : f32 to vector<1x64xf32>
    %144 = arith.mulf %119, %143 : vector<1x64xf32>
    %c1_134 = arith.constant 1 : index
    %c1_135 = arith.constant 1 : index
    %145 = memref.load %arg2[%c1_134, %c1_135] : memref<4x2xf32, #tpu.memory_space<smem>>
    %146 = vector.broadcast %145 : f32 to vector<1x64xf32>
    %147 = arith.mulf %121, %146 : vector<1x64xf32>
    %148 = arith.addf %144, %147 : vector<1x64xf32>
    %c2_136 = arith.constant 2 : index
    %c1_137 = arith.constant 1 : index
    %149 = memref.load %arg2[%c2_136, %c1_137] : memref<4x2xf32, #tpu.memory_space<smem>>
    %150 = vector.broadcast %149 : f32 to vector<1x64xf32>
    %151 = arith.mulf %123, %150 : vector<1x64xf32>
    %152 = arith.addf %148, %151 : vector<1x64xf32>
    %c3_138 = arith.constant 3 : index
    %c1_139 = arith.constant 1 : index
    %153 = memref.load %arg2[%c3_138, %c1_139] : memref<4x2xf32, #tpu.memory_space<smem>>
    %154 = vector.broadcast %153 : f32 to vector<1x64xf32>
    %155 = arith.mulf %125, %154 : vector<1x64xf32>
    %156 = arith.addf %152, %155 : vector<1x64xf32>
    %157 = arith.maximumf %117, %156 : vector<1x64xf32>
    %c0_140 = arith.constant 0 : index
    %158 = memref.load %arg3[%c0_140] : memref<2xf32, #tpu.memory_space<smem>>
    %159 = vector.broadcast %158 : f32 to vector<1x64xf32>
    %160 = arith.addf %141, %159 : vector<1x64xf32>
    %cst = arith.constant 0.000000e+00 : f32
    %161 = vector.broadcast %cst : f32 to vector<1x64xf32>
    %162 = arith.maximumf %160, %161 : vector<1x64xf32>
    %c1_141 = arith.constant 1 : index
    %163 = memref.load %arg3[%c1_141] : memref<2xf32, #tpu.memory_space<smem>>
    %164 = vector.broadcast %163 : f32 to vector<1x64xf32>
    %165 = arith.addf %157, %164 : vector<1x64xf32>
    %cst_142 = arith.constant 0.000000e+00 : f32
    %166 = vector.broadcast %cst_142 : f32 to vector<1x64xf32>
    %167 = arith.maximumf %165, %166 : vector<1x64xf32>
    %168 = tpu.concatenate %162, %167 in 0 : vector<1x64xf32>, vector<1x64xf32> -> vector<2x64xf32>
    %169 = arith.truncf %168 : vector<2x64xf32> to vector<2x64xbf16>
    %c0_143 = arith.constant 0 : index
    %c0_144 = arith.constant 0 : index
    %170 = vector.load %arg4[%c0_143, %c0_144] : memref<64x1024xbf16, #tpu.memory_space<vmem>>, vector<64x1024xbf16>
    %cst_145 = arith.constant dense<0.000000e+00> : vector<2x1024xf32>
    %171 = tpu.matmul %169, %170, %cst_145 {dimension_numbers = #tpu.dot_dimension_numbers<[1], [0], [0], [1], [0, 0, 1, 1], [], []>} : vector<2x64xbf16>, vector<64x1024xbf16>, vector<2x1024xf32> -> vector<2x1024xf32>
    %c0_146 = arith.constant 0 : index
    %c0_147 = arith.constant 0 : index
    %172 = vector.load %arg5[%c0_146, %c0_147] : memref<1x1024xf32, #tpu.memory_space<vmem>>, vector<1x1024xf32>
    %173 = vector.broadcast %172 : vector<1x1024xf32> to vector<2x1024xf32>
    %174 = arith.addf %171, %173 : vector<2x1024xf32>
    %cst_148 = arith.constant 5.000000e-01 : f32
    %175 = vector.broadcast %cst_148 : f32 to vector<2x1024xf32>
    %176 = arith.mulf %175, %174 : vector<2x1024xf32>
    %cst_149 = arith.constant 0.707106769 : f32
    %177 = vector.broadcast %cst_149 : f32 to vector<2x1024xf32>
    %178 = arith.mulf %174, %177 : vector<2x1024xf32>
    %179 = math.erf %178 : vector<2x1024xf32>
    %cst_150 = arith.constant 1.000000e+00 : f32
    %180 = vector.broadcast %cst_150 : f32 to vector<2x1024xf32>
    %181 = arith.addf %180, %179 : vector<2x1024xf32>
    %182 = arith.mulf %176, %181 : vector<2x1024xf32>
    %183 = arith.truncf %182 : vector<2x1024xf32> to vector<2x1024xbf16>
    %c0_151 = arith.constant 0 : index
    %c0_152 = arith.constant 0 : index
    %184 = vector.load %arg6[%c0_151, %c0_152] : memref<1024x128xbf16, #tpu.memory_space<vmem>>, vector<1024x128xbf16>
    %cst_153 = arith.constant dense<0.000000e+00> : vector<2x128xf32>
    %185 = tpu.matmul %183, %184, %cst_153 {dimension_numbers = #tpu.dot_dimension_numbers<[1], [0], [0], [1], [0, 0, 1, 1], [], []>} : vector<2x1024xbf16>, vector<1024x128xbf16>, vector<2x128xf32> -> vector<2x128xf32>
    %c0_154 = arith.constant 0 : index
    %c0_155 = arith.constant 0 : index
    %186 = vector.load %arg7[%c0_154, %c0_155] : memref<1x128xf32, #tpu.memory_space<vmem>>, vector<1x128xf32>
    %187 = vector.broadcast %186 : vector<1x128xf32> to vector<2x128xf32>
    %188 = arith.addf %185, %187 : vector<2x128xf32>
    %c0_156 = arith.constant 0 : index
    %c0_157 = arith.constant 0 : index
    %c0_158 = arith.constant 0 : index
    %189 = vector.load %arg8[%c0_156, %c0_157, %c0_158] : memref<1x2x128xf32, #tpu.memory_space<vmem>>, vector<1x2x128xf32>
    %190 = vector.shape_cast %189 : vector<1x2x128xf32> to vector<2x128xf32>
    %191 = vector.shape_cast %188 : vector<2x128xf32> to vector<1x2x128xf32>
    tpu.vector_store %arg8[%c0_156, %c0_157, %c0_158], %191 {strides = array<i32>} : memref<1x2x128xf32, #tpu.memory_space<vmem>>, vector<1x2x128xf32>,
    return
  }
  func.func @transform_0(%arg0: i32) -> (i32, i32, i32, i32, i32) {
    %c0_i32 = arith.constant 0 : i32
    %c0_i32_0 = arith.constant 0 : i32
    %c0_i32_1 = arith.constant 0 : i32
    %c0_i32_2 = arith.constant 0 : i32
    %c0_i32_3 = arith.constant 0 : i32
    return %arg0, %c0_i32, %c0_i32_0, %c0_i32_1, %c0_i32_2 : i32, i32, i32, i32, i32
  }
  func.func @transform_1(%arg0: i32) -> (i32, i32) {
    %c0_i32 = arith.constant 0 : i32
    %c0_i32_0 = arith.constant 0 : i32
    %c0_i32_1 = arith.constant 0 : i32
    return %c0_i32, %c0_i32_0 : i32, i32
  }
  func.func @transform_2(%arg0: i32) -> i32 {
    %c0_i32 = arith.constant 0 : i32
    %c0_i32_0 = arith.constant 0 : i32
    return %c0_i32 : i32
  }
  func.func @transform_3(%arg0: i32) -> (i32, i32) {
    %c0_i32 = arith.constant 0 : i32
    %c0_i32_0 = arith.constant 0 : i32
    %c0_i32_1 = arith.constant 0 : i32
    return %c0_i32, %c0_i32_0 : i32, i32
  }
  func.func @transform_4(%arg0: i32) -> (i32, i32) {
    %c0_i32 = arith.constant 0 : i32
    %c0_i32_0 = arith.constant 0 : i32
    %c0_i32_1 = arith.constant 0 : i32
    return %c0_i32, %c0_i32_0 : i32, i32
  }
  func.func @transform_5(%arg0: i32) -> (i32, i32) {
    %c0_i32 = arith.constant 0 : i32
    %c0_i32_0 = arith.constant 0 : i32
    %c0_i32_1 = arith.constant 0 : i32
    return %c0_i32, %c0_i32_0 : i32, i32
  }
  func.func @transform_6(%arg0: i32) -> (i32, i32) {
    %c0_i32 = arith.constant 0 : i32
    %c0_i32_0 = arith.constant 0 : i32
    %c0_i32_1 = arith.constant 0 : i32
    return %c0_i32, %c0_i32_0 : i32, i32
  }
  func.func @transform_7(%arg0: i32) -> (i32, i32, i32) {
    %c0_i32 = arith.constant 0 : i32
    %c0_i32_0 = arith.constant 0 : i32
    %c0_i32_1 = arith.constant 0 : i32
    return %arg0, %c0_i32, %c0_i32_0 : i32, i32, i32
  }
}

</mosaic_0001>

<bundles_post_ra>
// kernel: tpu_custom_call.1
= control target key start
LH: loop header
LB: loop body
LE: loop exit
PB: predicated region body
PF: predicated region fallthrough
CT: control target
= control target key end

     0   :  { %12 = vsyncpa [#allocation3], 0  ;;  %s2800_s0 = inlined_call_operand.hbm [shape: f32[2,4,4,1,64], index: 0, kind: input, shape index: {}]   ;;  %s2801_s1 = inlined_call_operand.vmem [shape: f32[4,2], index: 1, kind: input, shape index: {}]   ;;  %s2802_s2 = inlined_call_operand.vmem [shape: f32[2], index: 2, kind: input, shape index: {}]   ;;  %s2803_s3 = inlined_call_operand.hbm [shape: bf16[64,1024], index: 3, kind: input, shape index: {}]   ;;  %s2804_s4 = inlined_call_operand.vmem [shape: f32[1,1024], index: 4, kind: input, shape index: {}]   ;;  %s2805_s5 = inlined_call_operand.hbm [shape: bf16[1024,128], index: 5, kind: input, shape index: {}]   ;;  %s2806_s6 = inlined_call_operand.vmem [shape: f32[1,128], index: 6, kind: input, shape index: {}]   ;;  %s2807_s7 = inlined_call_operand.hbm [shape: f32[2,2,128], index: 7, kind: output, shape index: {}]  }
   0x1   :  { %14 = vsyncpa [#allocation3 + $0x1], 0 }
   0x2   :  { %15 = vsyncpa [#allocation5], 0 }
   0x3   :  { %16 = vsyncpa [#allocation8], 0 }
   0x4   :  { %17 = vsyncpa [#allocation10], 0 }
   0x5   :  { %18 = vsyncpa [#allocation4], 0 }
   0x6   :  { %20 = vsyncpa [#allocation4 + $0x1], 0  ;;  %s2392_s24 = smov 0   ;;  %s2394_s25 = smov 0  }
   0x7   :  { %s2396_s26 = smov 0   ;;  %s2398_s27 = smov 0  }
   0x8 LB: > { %s2413_s28 = sadd.s32 4294967295, %s2337_s27   ;;  %s1735_s29 = sadd.s32 4294967294, %s2337_s27   ;;  %s2337_s27 = sphi %s2398_s27, %s2832_s27   ;;  %s2333_s26 = sphi %s2396_s26, %s2831_s26   ;;  %s2329_s25 = sphi %s2394_s25, %s2830_s25   ;;  %s2325_s24 = sphi %s2392_s24, %s2829_s24  }
   0x9   : > { %p46_p0 = scmp.ne.s32.totalorder %s2329_s25, %s2325_s24  ;;  %p2808_p1 = scmp.eq.s32.totalorder %s2413_s28, 0 }
   0xa   : > { %p202_p3 = scmp.eq.s32.totalorder %s1735_s29, 1  ;;  %p1736_p5 = scmp.ge.s32.totalorder %s2337_s27, 1 }
   0xb   : > { %p2422_p4 = por %p2808_p1, %p46_p0  ;;  %p209_p7 = scmp.lt.s32.totalorder %s2337_s27, 3 }
   0xc   : > { %p2427_p6 = por %p202_p3, %p46_p0  ;;  %s2339_s10 = smov [#allocation9]  }
   0xd   : > { %s2811_s30 = scalar_select %p2422_p4, 1, 0 }
   0xe   : > { %s2812_s8 = scalar_select %p2427_p6, 1, 0 }
   0xf   : > { %p2432_p8 = pnand %p1736_p5, %p209_p7  ;;  %s243_s11 = sshll.u32 %s2339_s10, 4  ;;  %s2436_s11 = int_to_ptr.vmem [resolvable:$true] %s243_s11 }
  0x10   : > { %s222_s14 = sshll.u32 %s2801_s1, 4  ;;  %s233_s18 = sshll.u32 %s2802_s2, 4  ;;  %s2450_s14 = int_to_ptr.vmem [resolvable:$true] %s222_s14  ;;  %s2455_s18 = int_to_ptr.vmem [resolvable:$true] %s233_s18 }
  0x11   : > { %s2813_s9 = scalar_select %p2432_p8, 1, 0 }
  0x12   : > { %p1989_p9 = pneg %p2432_p8  ;;  %s2143_s21 = scalar_lea.hbm %s2803_s3, 4096 }
  0x13   : > { %p2144_p12 = scmp.ne.s32.totalorder %s2803_s3, %s2143_s21  ;;  %p2150_p5 = scmp.lt.u32.totalorder %s2143_s21, %s2803_s3 }
  0x14   : > { %p2446_p11 = pnand %p1989_p9, %p2808_p1 }
  0x16   : > { %p2465_p13 = pneg %p2446_p11 }
  0x18   : > { %p2146_p0 = pnand %p2465_p13, %p2144_p12 }
  0x1a   : > { %p2147_p3 = pneg %p2146_p0 }
  0x1c   : > { %p2152_p7 = pnand %p2150_p5, %p2147_p3 }
  0x1e   : > { %2155 = shalt.err (!%p2152_p7)
}
  0x1f   : > { %s2156_s13 = scalar_lea.vmem %s2436_s11, 4096  ;;  %p2164_p2 = scmp.lt.s32.totalorder %s2436_s11, %s2436_s11 }
  0x20   : > { %p2157_p9 = scmp.ne.s32.totalorder %s2436_s11, %s2156_s13  ;;  %p2165_p6 = scmp.lt.s32.totalorder %s2156_s13, %s2156_s13 }
  0x22   : > { %p2159_p10 = pnand %p2157_p9, %p2465_p13  ;;  %p2166_p12 = por %p2165_p6, %p2164_p2 }
  0x24   : > { %p2160_p1 = pneg %p2159_p10 }
  0x26   : > { %p2167_p0 = pnand %p2166_p12, %p2160_p1 }
  0x28   : > { %2170 = shalt.err (!%p2167_p0)
}
  0x29   : > { %s2340_s16 = smov 512   ;;  %s2341_s17 = smov 32  }
  0x2a   : > { %1998 = dma.hbm_to_vmem [thread:$0]  (!%p2446_p11), %s2803_s3, 4096, %s2436_s11, [#allocation10], %s2340_s16, %s2340_s16, %s2341_s17  }
  0x2b   : > { %s2171_s21 = scalar_lea.vmem %s2450_s14, 64  ;;  %p2179_p1 = scmp.lt.s32.totalorder %s2450_s14, %s2450_s14 }
  0x2c   : > { %p2172_p10 = scmp.ne.s32.totalorder %s2450_s14, %s2171_s21  ;;  %p2180_p6 = scmp.lt.s32.totalorder %s2171_s21, %s2171_s21 }
  0x2e   : > { %p2174_p3 = pnand %p2172_p10, %p2465_p13  ;;  %p2181_p5 = por %p2180_p6, %p2179_p1 }
  0x30   : > { %p2175_p2 = pneg %p2174_p3 }
  0x32   : > { %p2182_p7 = pnand %p2181_p5, %p2175_p2 }
  0x34   : > { %2185 = shalt.err (!%p2182_p7)
}
  0x35   : > { %s2342_s22 = smov [#allocation6]   ;;  %s2186_s11 = scalar_lea.vmem %s2455_s18, 16 }
  0x36   : > { %1992 = dma.vmem_to_smem (!%p2446_p11), %s2450_s14, 64, %s2342_s22, [#allocation5]  }
  0x37   : > { %p2187_p9 = scmp.ne.s32.totalorder %s2455_s18, %s2186_s11  ;;  %p2194_p10 = scmp.lt.s32.totalorder %s2455_s18, %s2455_s18 }
  0x38   : > { %p2195_p3 = scmp.lt.s32.totalorder %s2186_s11, %s2186_s11 }
  0x39   : > { %p2189_p12 = pnand %p2187_p9, %p2465_p13 }
  0x3a   : > { %p2196_p1 = por %p2195_p3, %p2194_p10 }
  0x3b   : > { %p2190_p0 = pneg %p2189_p12 }
  0x3d   : > { %p2197_p2 = pnand %p2196_p1, %p2190_p0 }
  0x3f   : > { %2200 = shalt.err (!%p2197_p2)
}
  0x40   : > { %s2343_s23 = smov [#allocation7]   ;;  %s2344_s10 = smov [#allocation11]  }
  0x41   : > { %1995 = dma.vmem_to_smem (!%p2446_p11), %s2455_s18, 16, %s2343_s23, [#allocation8]  }
  0x42   : > { %s259_s12 = sshll.u32 %s2344_s10, 4  ;;  %s2201_s16 = scalar_lea.hbm %s2805_s5, 8192  ;;  %s260_s12 = int_to_ptr.vmem [resolvable:$true] %s259_s12 }
  0x43   : > { %p2202_p6 = scmp.ne.s32.totalorder %s2805_s5, %s2201_s16  ;;  %p2208_p9 = scmp.lt.u32.totalorder %s2201_s16, %s2805_s5 }
  0x45   : > { %p2204_p5 = pnand %p2202_p6, %p2465_p13 }
  0x47   : > { %p2205_p7 = pneg %p2204_p5 }
  0x49   : > { %p2210_p12 = pnand %p2208_p9, %p2205_p7 }
  0x4b   : > { %2213 = shalt.err (!%p2210_p12)
}
  0x4c   : > { %s2214_s18 = scalar_lea.vmem %s260_s12, 8192  ;;  %p2222_p1 = scmp.lt.s32.totalorder %s260_s12, %s260_s12 }
  0x4d   : > { %p2215_p0 = scmp.ne.s32.totalorder %s260_s12, %s2214_s18  ;;  %p2223_p2 = scmp.lt.s32.totalorder %s2214_s18, %s2214_s18 }
  0x4f   : > { %p2217_p10 = pnand %p2215_p0, %p2465_p13  ;;  %p2224_p4 = por %p2223_p2, %p2222_p1 }
  0x51   : > { %p2218_p3 = pneg %p2217_p10 }
  0x53   : > { %p2225_p8 = pnand %p2224_p4, %p2218_p3 }
  0x55   : > { %2228 = shalt.err (!%p2225_p8)
}
  0x56   : > { %s2345_s22 = smov 64   ;;  %s2346_s29 = smov 4  }
  0x57   : > { %2001 = dma.hbm_to_vmem [thread:$0]  (!%p2446_p11), %s2805_s5, 8192, %s260_s12, [#allocation10], %s2345_s22, %s2345_s22, %s2346_s29  }
  0x58   : > { %s2523_s10 = sadd.s32 1, %s2337_s27   ;;  %s33_s13 = sadd.s32 1, %s2333_s26 }
  0x59   : > { %s30_s14 = ssub.s32 %s2337_s27, %s2523_s10  ;;  %p40_p8 = scmp.ne.s32.totalorder %s2333_s26, %s2329_s25 }
  0x5a   : > { %p31_p4 = scmp.eq.s32.totalorder %s30_s14, 0  ;;  %p41_p13 = scmp.eq.s32.totalorder %s2337_s27, 0 }
  0x5b   : > { %p2816_p5 = scmp.eq.s32.totalorder %s2413_s28, 1  ;;  %p2014_p9 = scmp.lt.s32.totalorder %s2337_s27, 2 }
  0x5c   : > { %s2532_s16 = scalar_select %p31_p4, %s2333_s26, %s33_s13  }
  0x5d   : > { %p42_p6 = por %p41_p13, %p40_p8  ;;  %p2536_p7 = por %p2816_p5, %p40_p8 }
  0x5e   : > { %s276_s15 = sand.u32 1, %s2333_s26   ;;  %s1880_s12 = sshll.u32 %s2337_s27, 8 }
  0x5f   : > { %s1742_s19 = sshll.u32 %s276_s15, 4  ;;  %s2546_s18 = scalar_lea.hbm %s2800_s0, %s1880_s12 }
  0x60   : > { %s280_s22 = scalar_lea.vmem [#allocation2], %s1742_s19  ;;  %p2550_p11 = pnand %p2014_p9, %p42_p6 }
  0x61   : > { %s287_s29 = sshll.u32 %s280_s22, 4  ;;  %s2554_s23 = scalar_lea.sflag [#allocation3], %s276_s15  ;;  %s2548_s29 = int_to_ptr.vmem [resolvable:$true] %s287_s29 }
  0x62   : > { %s2229_s14 = scalar_lea.hbm %s2546_s18, 256  ;;  %p2231_p0 = pneg %p2550_p11 }
  0x63   : > { %p2230_p12 = scmp.ne.s32.totalorder %s2546_s18, %s2229_s14  ;;  %s2234_s12 = scalar_lea.hbm %s2800_s0, 512 }
  0x64   : > { %p2235_p1 = scmp.lt.u32.totalorder %s2546_s18, %s2800_s0  ;;  %p2236_p2 = scmp.lt.u32.totalorder %s2234_s12, %s2229_s14 }
  0x65   : > { %p2232_p10 = pnand %p2231_p0, %p2230_p12  ;;  %p2238_p8 = scmp.lt.u32.totalorder %s2229_s14, %s2546_s18 }
  0x66   : > { %p2237_p4 = por %p2236_p2, %p2235_p1 }
  0x67   : > { %p2233_p3 = pneg %p2232_p10 }
  0x68   : > { %p2239_p13 = por %p2238_p8, %p2237_p4 }
  0x6a   : > { %p2240_p6 = pnand %p2239_p13, %p2233_p3 }
  0x6c   : > { %2243 = shalt.err (!%p2240_p6)
}
  0x6d   : > { %s2244_s15 = scalar_lea.vmem %s2548_s29, 256  ;;  %s2347_s22 = smov [#allocation2]  }
  0x6e   : > { %p2245_p5 = scmp.ne.s32.totalorder %s2548_s29, %s2244_s15  ;;  %s2249_s13 = sshll.u32 %s2347_s22, 4  ;;  %s2250_s13 = int_to_ptr.vmem [resolvable:$false] %s2249_s13 }
  0x6f   : > { %s2251_s19 = scalar_lea.vmem %s2250_s13, 512  ;;  %p2252_p10 = scmp.lt.s32.totalorder %s2548_s29, %s2250_s13 }
  0x70   : > { %p2247_p9 = pnand %p2245_p5, %p2231_p0  ;;  %p2253_p1 = scmp.lt.s32.totalorder %s2251_s19, %s2244_s15 }
  0x72   : > { %p2248_p12 = pneg %p2247_p9  ;;  %p2254_p2 = por %p2253_p1, %p2252_p10 }
  0x74   : > { %p2255_p4 = pnand %p2254_p2, %p2248_p12 }
  0x76   : > { %2258 = shalt.err (!%p2255_p4)
}
  0x77   : > { %s2348_s14 = smov 16   ;;  %s2349_s12 = smov 1  }
  0x78   : > { %2005 = dma.hbm_to_vmem [thread:$0]  (!%p2550_p11), %s2546_s18, 256, %s2548_s29, %s2554_s23, %s2348_s14, %s2348_s14, %s2349_s12  }
  0x79   : > { %p2819_p0 = scmp.ne.s32.totalorder %s2813_s9, 0 }
  0x7a   : > { %s2585_s20 = sand.u32 (!%p2819_p0), 1, %s2329_s25   ;;  %p2820_p3 = scmp.ne.s32.totalorder (!%p2819_p0), %s2811_s30, 0 }
  0x7b   : > { %299 = sbr.rel (%p2819_p0) target bundleno = 685 (0x2ad), region = 48  ;;  %s1746_s21 = sshll.u32 (!%p2819_p0), %s2585_s20, 4 }
  0x7c   : > { %s302_s15 = scalar_lea.sflag (!%p2819_p0), [#allocation3], %s2585_s20  ;;  %s2589_s22 = scalar_lea.vmem (!%p2819_p0), [#allocation2], %s1746_s21 }
  0x82   : > { %2304 = dma.done.wait (%p2820_p3), %s302_s15, 256  }
  0x83   : > { %2306 = vsyncadd (%p2820_p3), %s302_s15, 4294967040  ;;  %p2821_p11 = scmp.eq.s32.totalorder %s2413_s28, 0 }
  0x85   : > { %2308 = dma.done.wait (%p2821_p11), [#allocation5], 64   ;;  %p2822_p8 = pmov %p2821_p11 }
  0x87   : > { %2310 = vsyncadd (%p2822_p8), [#allocation5], 4294967232  ;;  %p2823_p13 = pmov %p2822_p8 }
  0x88   : > { %p2824_p6 = pmov %p2822_p8 }
  0x89   : > { %2312 = dma.done.wait (%p2823_p13), [#allocation8], 16  }
  0x8a   : > { %2314 = vsyncadd (%p2824_p6), [#allocation8], 4294967280  ;;  %p2825_p5 = pmov %p2824_p6 }
  0x8c   : > { %2316 = dma.done.wait (%p2825_p5), [#allocation10], 12288   ;;  %p2826_p9 = pmov %p2825_p5 }
  0x8e   : > { %2318 = vsyncadd (%p2826_p9), [#allocation10], 4294955008 }
  0x8f   : > { %326 = sfence }
  0x90   : > { %v480_v0 = vld [vmem:[#allocation9] sm:$0xff]  ;;  %v481_v2 = vld [vmem:[#allocation9 + $0x8] sm:$0xff]  ;;  %s2607_s30 = sld [smem:[#allocation6]]  ;;  %v2350_v8 = vmov 0   ;;  %s2629_s11 = sld [smem:[#allocation6 + $0x1]]  ;;  %vm477_vm0 = vcmask 1040384  }
  0x91   : > { %v484_v1 = vld [vmem:[#allocation9 + $0x20] sm:$0xff]  ;;  %v485_v4 = vld [vmem:[#allocation9 + $0x28] sm:$0xff]  ;;  %750 = vmatprep.mubr.bf16.mxu0 %v2350_v8  ;;  %791 = vmatprep.mubr.bf16.mxu1 %v2350_v8  ;;  %s2611_s9 = sld [smem:[#allocation6 + $0x80]]  ;;  %s2646_s23 = sld [smem:[#allocation6 + $0x81]]  ;;  %vm714_vm1 = vcmask 523264  }
  0x92   : > { %v1776_v3 = vcombine.high %v480_v0, %v484_v1  ;;  %v1775_v5 = vcombine.low %v480_v0, %v484_v1  ;;  %v488_v6 = vld [vmem:[#allocation9 + $0x40] sm:$0xff]  ;;  %v1778_v9 = vcombine.high %v481_v2, %v485_v4  ;;  %v1777_v10 = vcombine.low %v481_v2, %v485_v4  ;;  %v489_v12 = vld [vmem:[#allocation9 + $0x48] sm:$0xff]  ;;  %s2615_s18 = sld [smem:[#allocation6 + $0x100]]  ;;  %s2656_s13 = sld [smem:[#allocation6 + $0x101]] }
  0x93   : > { %v492_v7 = vld [vmem:[#allocation9 + $0x60] sm:$0xff]  ;;  %v493_v13 = vld [vmem:[#allocation9 + $0x68] sm:$0xff]  ;;  %s2621_s29 = sld [smem:[#allocation6 + $0x180]]  ;;  %s2658_s19 = sld [smem:[#allocation6 + $0x181]] }
  0x94   : > { %v1784_v11 = vcombine.high %v488_v6, %v492_v7  ;;  %v2613_v14 = vld [vmem:[#allocation9 + $0x80] sm:$0xff]  ;;  %718 = vmatprep.subr.bf16.mxu0 %v1776_v3  ;;  %v1786_v15 = vcombine.high %v489_v12, %v493_v13  ;;  %v2617_v17 = vld [vmem:[#allocation9 + $0x88] sm:$0xff]  ;;  %759 = vmatprep.subr.bf16.mxu1 %v1778_v9  ;;  %v1783_v19 = vcombine.low %v488_v6, %v492_v7  ;;  %s2697_s14 = sld [smem:[#allocation7]]  ;;  %s2700_s12 = sld [smem:[#allocation7 + $0x1]] }
  0x95   : > { %v500_v16 = vld [vmem:[#allocation9 + $0xa0] sm:$0xff]  ;;  %v2619_v18 = vld [vmem:[#allocation9 + $0xa8] sm:$0xff]  ;;  %719 = vmatpush1.bf16.msra.mxu0 %v1775_v5  ;;  %760 = vmatpush1.bf16.msra.mxu1 %v1777_v10  ;;  %v1785_v23 = vcombine.low %v489_v12, %v493_v13 }
  0x96   : > { %v2623_v20 = vld [vmem:[#allocation9 + $0xc0] sm:$0xff]  ;;  %v2627_v22 = vld [vmem:[#allocation9 + $0xc8] sm:$0xff]  ;;  %720 = vmatprep.subr.bf16.mxu0 %v1784_v11  ;;  %v1792_v24 = vcombine.high %v2613_v14, %v500_v16  ;;  %v1794_v25 = vcombine.high %v2617_v17, %v2619_v18  ;;  %761 = vmatprep.subr.bf16.mxu1 %v1786_v15  ;;  %v1791_v27 = vcombine.low %v2613_v14, %v500_v16  ;;  %v2644_v32 = vstv %s2607_s30 }
  0x97   : > { %v2625_v21 = vld [vmem:[#allocation9 + $0xe0] sm:$0xff]  ;;  %v2634_v26 = vld [vmem:[#allocation9 + $0xe8] sm:$0xff]  ;;  %v1793_v28 = vcombine.low %v2617_v17, %v2619_v18  ;;  %v2654_v36 = vstv %s2611_s9  ;;  %v377_v53 = vstv %s2629_s11  ;;  %v380_v63 = vstv %s2646_s23  ;;  %s1751_s9 = sshll.u32 %s2585_s20, 1 }
  0x98   : > { %v1800_v29 = vcombine.high %v2623_v20, %v2625_v21  ;;  %v354_v30 = vld [vmem:[%s2589_s22] sm:$0x1]  ;;  %v1752_v31 = vld [vmem:[%s2589_s22 + $0x1] sm:$0x1]  ;;  %v1802_v33 = vcombine.high %v2627_v22, %v2634_v26  ;;  %v1799_v34 = vcombine.low %v2623_v20, %v2625_v21  ;;  %v1762_v37 = vld [vmem:[%s2589_s22 + $0x4] sm:$0x1]  ;;  %v1801_v38 = vcombine.low %v2627_v22, %v2634_v26 }
  0x99   : > { %v363_v35 = vmul.f32 %v2644_v32, %v354_v30  ;;  %721 = vmatpush1.bf16.msra.mxu0 %v1783_v19  ;;  %v1753_v39 = vld [vmem:[%s2589_s22 + $0x2] sm:$0x1]  ;;  %v366_v40 = vmul.f32 %v1752_v31, %v2654_v36  ;;  %v2666_v41 = vstv %s2615_s18  ;;  %v1763_v42 = vld [vmem:[%s2589_s22 + $0x5] sm:$0x1]  ;;  %v1764_v43 = vld [vmem:[%s2589_s22 + $0x6] sm:$0x1]  ;;  %v399_v44 = vmul.f32 %v1762_v37, %v2644_v32  ;;  %762 = vmatpush1.bf16.msra.mxu1 %v1785_v23 }
  0x9a   : > { %722 = vmatprep.subr.bf16.mxu0 %v1792_v24  ;;  %v1754_v45 = vld [vmem:[%s2589_s22 + $0x3] sm:$0x1]  ;;  %v370_v46 = vmul.f32 %v1753_v39, %v2666_v41  ;;  %v2674_v47 = vstv %s2621_s29  ;;  %v1765_v48 = vld [vmem:[%s2589_s22 + $0x7] sm:$0x1]  ;;  %v400_v49 = vmul.f32 %v1763_v42, %v2654_v36  ;;  %v402_v50 = vmul.f32 %v1764_v43, %v2666_v41  ;;  %763 = vmatprep.subr.bf16.mxu1 %v1794_v25  ;;  %v1766_v55 = vld [vmem:[%s2589_s22 + $0x8] sm:$0x1] }
  0x9b   : > { %v367_v51 = vadd.f32 %v366_v40, %v363_v35  ;;  %v374_v52 = vmul.f32 %v1754_v45, %v2674_v47  ;;  %v404_v54 = vmul.f32 %v1765_v48, %v2674_v47  ;;  %v378_v56 = vmul.f32 %v377_v53, %v354_v30  ;;  %v1767_v59 = vld [vmem:[%s2589_s22 + $0x9] sm:$0x1]  ;;  %v1768_v60 = vld [vmem:[%s2589_s22 + $0xa] sm:$0x1]  ;;  %v1769_v15 = vld [vmem:[%s2589_s22 + $0xb] sm:$0x1] }
  0x9c   : > { %v401_v57 = vadd.f32 %v400_v49, %v399_v44  ;;  %v407_v58 = vmul.f32 %v1762_v37, %v377_v53  ;;  %v423_v61 = vmul.f32 %v1766_v55, %v2644_v32  ;;  %v424_v0 = vmul.f32 %v1767_v59, %v2654_v36  ;;  %v1770_v20 = vld [vmem:[%s2589_s22 + $0xc] sm:$0x1]  ;;  %v1771_v21 = vld [vmem:[%s2589_s22 + $0xd] sm:$0x1]  ;;  %v1772_v22 = vld [vmem:[%s2589_s22 + $0xe] sm:$0x1] }
  0x9d   : > { %723 = vmatpush1.bf16.msra.mxu0 %v1791_v27  ;;  %v371_v62 = vadd.f32 %v370_v46, %v367_v51  ;;  %v426_v1 = vmul.f32 %v1768_v60, %v2666_v41  ;;  %764 = vmatpush1.bf16.msra.mxu1 %v1793_v28  ;;  %v381_v2 = vmul.f32 %v1752_v31, %v380_v63  ;;  %v384_v3 = vstv %s2656_s13  ;;  %v1773_v27 = vld [vmem:[%s2589_s22 + $0xf] sm:$0x1]  ;;  %s1877_s18 = sshll.u32 %s2413_s28, 5  ;;  %s352_s29 = scalar_lea.vmem [#allocation12], %s1751_s9 }
  0x9e   : > { %724 = vmatprep.subr.bf16.mxu0 %v1800_v29  ;;  %v388_v4 = vstv %s2658_s19  ;;  %v403_v5 = vadd.f32 %v402_v50, %v401_v57  ;;  %765 = vmatprep.subr.bf16.mxu1 %v1802_v33  ;;  %v385_v7 = vmul.f32 %v1753_v39, %v384_v3  ;;  %v408_v10 = vmul.f32 %v1763_v42, %v380_v63  ;;  %v486_v39 = vld [vmem:[#allocation9 + $0x30] sm:$0xff]  ;;  %v487_v50 = vld [vmem:[#allocation9 + $0x38] sm:$0xff]  ;;  %s1624_s11 = sshll.u32 %s352_s29, 4  ;;  %s2756_s19 = scalar_lea.hbm %s2807_s7, %s1877_s18  ;;  %s2758_s11 = int_to_ptr.vmem [resolvable:$true] %s1624_s11 }
  0x9f   : > { %v375_v6 = vadd.f32 %v374_v52, %v371_v62  ;;  %v389_v9 = vmul.f32 %v1754_v45, %v388_v4  ;;  %v382_v11 = vadd.f32 %v381_v2, %v378_v56  ;;  %v410_v13 = vmul.f32 %v1764_v43, %v384_v3  ;;  %v483_v45 = vld [vmem:[#allocation9 + $0x18] sm:$0xff]  ;;  %s2351_s28 = smov [#allocation12]  }
  0xa0   : > { %v405_v12 = vadd.f32 %v404_v54, %v403_v5  ;;  %v412_v14 = vmul.f32 %v1765_v48, %v388_v4  ;;  %v409_v16 = vadd.f32 %v408_v10, %v407_v58  ;;  %v425_v17 = vadd.f32 %v424_v0, %v423_v61  ;;  %v491_v10 = vld [vmem:[#allocation9 + $0x58] sm:$0xff]  ;;  %s2263_s21 = sshll.u32 %s2351_s28, 4  ;;  %s2264_s21 = int_to_ptr.vmem [resolvable:$false] %s2263_s21 }
  0xa1   : > { %725 = vmatpush1.bf16.msra.mxu0 %v1799_v34  ;;  %v428_v18 = vmul.f32 %v1769_v15, %v2674_v47  ;;  %v431_v19 = vmul.f32 %v1766_v55, %v377_v53  ;;  %766 = vmatpush1.bf16.msra.mxu1 %v1801_v38  ;;  %v386_v23 = vadd.f32 %v385_v7, %v382_v11  ;;  %v482_v38 = vld [vmem:[#allocation9 + $0x10] sm:$0xff]  ;;  %v472_v54 = vlaneseq  ;;  %v495_v11 = vld [vmem:[#allocation9 + $0x78] sm:$0xff]  ;;  %s2265_s15 = scalar_lea.vmem %s2264_s21, 64  ;;  %p2266_p2 = scmp.lt.s32.totalorder %s2758_s11, %s2264_s21 }
  0xa2   : > { %v406_v24 = vmax.f32 %v375_v6, %v405_v12  ;;  %v432_v25 = vmul.f32 %v1767_v59, %v380_v63  ;;  %v434_v26 = vmul.f32 %v1768_v60, %v384_v3  ;;  %v411_v28 = vadd.f32 %v410_v13, %v409_v16  ;;  %v490_v7 = vld [vmem:[#allocation9 + $0x50] sm:$0xff] }
  0xa3   : > { %v427_v29 = vadd.f32 %v426_v1, %v425_v17  ;;  %v436_v30 = vmul.f32 %v1769_v15, %v388_v4  ;;  %v447_v31 = vmul.f32 %v1770_v20, %v2644_v32  ;;  %v390_v33 = vadd.f32 %v389_v9, %v386_v23  ;;  %v494_v9 = vld [vmem:[#allocation9 + $0x70] sm:$0xff] }
  0xa4   : > { %v433_v34 = vadd.f32 %v432_v25, %v431_v19  ;;  %v448_v35 = vmul.f32 %v1771_v21, %v2654_v36  ;;  %v450_v37 = vmul.f32 %v1772_v22, %v2666_v41  ;;  %v413_v40 = vadd.f32 %v412_v14, %v411_v28  ;;  %v498_v16 = vld [vmem:[#allocation9 + $0x90] sm:$0xff]  ;;  %v503_v19 = vld [vmem:[#allocation9 + $0xb8] sm:$0xff] }
  0xa5   : > { %v429_v42 = vadd.f32 %v428_v18, %v427_v29  ;;  %v452_v43 = vmul.f32 %v1773_v27, %v2674_v47  ;;  %v455_v44 = vmul.f32 %v1770_v20, %v377_v53  ;;  %v456_v32 = vmul.f32 %v1771_v21, %v380_v63  ;;  %v502_v17 = vld [vmem:[#allocation9 + $0xb0] sm:$0xff]  ;;  %v499_v18 = vld [vmem:[#allocation9 + $0x98] sm:$0xff] }
  0xa6   : > { %v435_v46 = vadd.f32 %v434_v26, %v433_v34  ;;  %v449_v48 = vadd.f32 %v448_v35, %v447_v31  ;;  %v458_v49 = vmul.f32 %v1772_v22, %v384_v3  ;;  %v414_v51 = vmax.f32 %v390_v33, %v413_v40  ;;  %v506_v25 = vld [vmem:[#allocation9 + $0xd0] sm:$0xff]  ;;  %v511_v28 = vld [vmem:[#allocation9 + $0xf8] sm:$0xff] }
  0xa7   : > { %v430_v52 = vmax.f32 %v406_v24, %v429_v42  ;;  %v457_v55 = vadd.f32 %v456_v32, %v455_v44  ;;  %v460_v56 = vmul.f32 %v1773_v27, %v388_v4  ;;  %v1780_v57 = vcombine.high %v482_v38, %v486_v39  ;;  %v510_v26 = vld [vmem:[#allocation9 + $0xf0] sm:$0xff]  ;;  %v507_v27 = vld [vmem:[#allocation9 + $0xd8] sm:$0xff]  ;;  %v2065_v42 = vld [vmem:[#allocation11] sm:$0xff]  }
  0xa8   : > { %v437_v36 = vadd.f32 %v436_v30, %v435_v46  ;;  %v451_v41 = vadd.f32 %v450_v37, %v449_v48  ;;  %v1782_v58 = vcombine.high %v483_v45, %v487_v50  ;;  %v464_v60 = vstv %s2697_s14  ;;  %v2063_v37 = vld [vmem:[#allocation11 + $0x40] sm:$0xff]   ;;  %v2067_v44 = vld [vmem:[#allocation11 + $0x48] sm:$0xff]   ;;  %v2071_v48 = vld [vmem:[#allocation11 + $0x50] sm:$0xff]   ;;  %s1611_s14 = scalar_lea.sflag [#allocation4], %s2585_s20 }
  0xa9   : > { %v459_v53 = vadd.f32 %v458_v49, %v457_v55  ;;  %800 = vmatprep.subr.bf16.mxu0 %v1780_v57  ;;  %v2706_v63 = vshrl.u32 %v472_v54, 7  ;;  %v468_v0 = vstv %s2700_s12  ;;  %v1779_v14 = vcombine.low %v482_v38, %v486_v39  ;;  %v2064_v38 = vld [vmem:[#allocation11 + $0xc0] sm:$0xff]   ;;  %v2070_v46 = vld [vmem:[#allocation11 + $0x88] sm:$0xff]   ;;  %v2072_v32 = vld [vmem:[#allocation11 + $0xd0] sm:$0xff]   ;;  %s2259_s12 = scalar_lea.vmem %s2758_s11, 32 }
  0xaa   : > { %v438_v59 = vmax.f32 %v414_v51, %v437_v36  ;;  %v453_v47 = vadd.f32 %v452_v43, %v451_v41  ;;  %841 = vmatprep.subr.bf16.mxu1 %v1782_v58  ;;  %v1781_v15 = vcombine.low %v483_v45, %v487_v50  ;;  %v1788_v21 = vcombine.high %v490_v7, %v494_v9  ;;  %v2066_v43 = vld [vmem:[#allocation11 + $0x80] sm:$0xff]   ;;  %v2069_v45 = vld [vmem:[#allocation11 + $0x8] sm:$0xff]   ;;  %v2073_v49 = vld [vmem:[#allocation11 + $0x10] sm:$0xff]   ;;  %p2260_p12 = scmp.ne.s32.totalorder %s2758_s11, %s2259_s12  ;;  %p2267_p4 = scmp.lt.s32.totalorder %s2265_s15, %s2259_s12 }
  0xab   : > { %v461_v62 = vadd.f32 %v460_v56, %v459_v53  ;;  %v474_v5 = vsub.s32 0, %v2706_v63  ;;  %v1790_v22 = vcombine.high %v491_v10, %v495_v11  ;;  %v1787_v23 = vcombine.low %v490_v7, %v494_v9  ;;  %v2074_v50 = vld [vmem:[#allocation11 + $0x90] sm:$0xff]   ;;  %v2075_v51 = vld [vmem:[#allocation11 + $0x58] sm:$0xff]   ;;  %v2079_v41 = vld [vmem:[#allocation11 + $0x60] sm:$0xff]  }
  0xac   : > { %v454_v61 = vmax.f32 %v430_v52, %v453_v47  ;;  %v1789_v24 = vcombine.low %v491_v10, %v495_v11  ;;  %v1796_v29 = vcombine.high %v498_v16, %v502_v17  ;;  %v1798_v30 = vcombine.high %v499_v18, %v503_v19  ;;  %v2076_v52 = vld [vmem:[#allocation11 + $0xd8] sm:$0xff]   ;;  %v2080_v55 = vld [vmem:[#allocation11 + $0xe0] sm:$0xff]   ;;  %v2083_v58 = vld [vmem:[#allocation11 + $0x68] sm:$0xff]   ;;  %p2261_p10 = pnand %p2260_p12, %p2536_p7  ;;  %p2268_p0 = por %p2267_p4, %p2266_p2 }
  0xad   : > { %v462_v1 = vmax.f32 %v438_v59, %v461_v62  ;;  %v1795_v31 = vcombine.low %v498_v16, %v502_v17  ;;  %v1797_v33 = vcombine.low %v499_v18, %v503_v19  ;;  %v1804_v34 = vcombine.high %v506_v25, %v510_v26  ;;  %v2077_v54 = vld [vmem:[#allocation11 + $0x18] sm:$0xff]   ;;  %v2081_v56 = vld [vmem:[#allocation11 + $0x20] sm:$0xff]   ;;  %v2084_v59 = vld [vmem:[#allocation11 + $0xe8] sm:$0xff]  }
  0xae   : > { %v465_v2 = vadd.f32 %v464_v60, %v454_v61  ;;  %v1806_v35 = vcombine.high %v507_v27, %v511_v28  ;;  %v1803_v39 = vcombine.low %v506_v25, %v510_v26  ;;  %v1805_v40 = vcombine.low %v507_v27, %v511_v28  ;;  %v2078_v36 = vld [vmem:[#allocation11 + $0x98] sm:$0xff]   ;;  %v2082_v57 = vld [vmem:[#allocation11 + $0xa0] sm:$0xff]   ;;  %v2085_v47 = vld [vmem:[#allocation11 + $0x28] sm:$0xff]   ;;  %p2262_p1 = pneg %p2261_p10 }
  0xaf   : > { %v469_v3 = vadd.f32 %v468_v0, %v462_v1  ;;  %v2086_v53 = vld [vmem:[#allocation11 + $0xa8] sm:$0xff]   ;;  %v2087_v60 = vld [vmem:[#allocation11 + $0x70] sm:$0xff]   ;;  %v2091_v1 = vld [vmem:[#allocation11 + $0x78] sm:$0xff]   ;;  %v524_v9 = vsub.s32 2, %v2706_v63  ;;  %v520_v11 = vsub.s32 1, %v2706_v63 }
  0xb0   : > { %v466_v4 = vmax.f32 %v465_v2, 0.0  ;;  %v2088_v61 = vld [vmem:[#allocation11 + $0xf0] sm:$0xff]   ;;  %v2092_v2 = vld [vmem:[#allocation11 + $0xf8] sm:$0xff]   ;;  %v2096_v7 = vld [vmem:[#allocation11 + $0x1c0] sm:$0xff]   ;;  %p2269_p3 = pnand %p2268_p0, %p2262_p1 }
  0xb1   : > { %v470_v6 = vmax.f32 %v469_v3, 0.0  ;;  %v2089_v62 = vld [vmem:[#allocation11 + $0x30] sm:$0xff]   ;;  %v2093_v3 = vld [vmem:[#allocation11 + $0x38] sm:$0xff]   ;;  %v2722_v10 = vld [vmem:[%s2804_s4] sm:$0xff] }
  0xb2   : > { %v2090_v0 = vld [vmem:[#allocation11 + $0xb0] sm:$0xff]  }
  0xb3   : > { %v475_v12 = vrot.slane %v470_v6, %v474_v5  ;;  %v2095_v6 = vld [vmem:[#allocation11 + $0x140] sm:$0xff]  }
  0xb5   : > { %v478_v13 = vsel %vm477_vm0, %v466_v4, %v475_v12  ;;  %v2094_v4 = vld [vmem:[#allocation11 + $0xb8] sm:$0xff]   ;;  %v528_v12 = vsub.s32 3, %v2706_v63 }
  0xb6   : > { %v479_v20 = vpack.c.bf16 %v478_v13, %v478_v13  ;;  %v517_v13 = vrot.slane %v2722_v10, %v474_v5 }
  0xb7   : > { %v529_v16 = vrot.slane %v2722_v10, %v528_v12 }
  0xb8   : > { %1807 = vmatmul.mubr.msk.bf16.vlgmr.msra.gmra.mrb[0].mxu0 %vm714_vm1, %v479_v20  ;;  %1808 = vmatmul.mubr.msk.bf16.vlgmr.msra.gmra.mrb[0].mxu1 %vm714_vm1, %v479_v20 }
  0xb9   : > { %801 = vmatpush1.bf16.msra.mxu0 %v1779_v14  ;;  %842 = vmatpush1.bf16.msra.mxu1 %v1781_v15  ;;  %v525_v14 = vrot.slane %v2722_v10, %v524_v9  ;;  %v521_v15 = vrot.slane %v2722_v10, %v520_v11  ;;  %v2098_v9 = vld [vmem:[#allocation11 + $0x180] sm:$0xff]  }
  0xba   : > { %802 = vmatprep.subr.bf16.mxu0 %v1788_v21  ;;  %843 = vmatprep.subr.bf16.mxu1 %v1790_v22 }
  0xbb   : > { %832 = vmatprep.mubr.bf16.mxu0 %v2350_v8  ;;  %873 = vmatprep.mubr.bf16.mxu1 %v2350_v8  ;;  %v2068_v8 = vld [vmem:[#allocation11 + $0xc8] sm:$0xff]  }
  0xbd   : > { %803 = vmatpush1.bf16.msra.mxu0 %v1787_v23  ;;  %844 = vmatpush1.bf16.msra.mxu1 %v1789_v24 }
  0xbe   : > { %804 = vmatprep.subr.bf16.mxu0 %v1796_v29  ;;  %845 = vmatprep.subr.bf16.mxu1 %v1798_v30 }
  0xc1   : > { %805 = vmatpush1.bf16.msra.mxu0 %v1795_v31  ;;  %846 = vmatpush1.bf16.msra.mxu1 %v1797_v33  ;;  %v536_v33 = vsub.s32 5, %v2706_v63 }
  0xc2   : > { %806 = vmatprep.subr.bf16.mxu0 %v1804_v34  ;;  %847 = vmatprep.subr.bf16.mxu1 %v1806_v35  ;;  %v544_v34 = vsub.s32 7, %v2706_v63 }
  0xc3   : > { %v537_v35 = vrot.slane %v2722_v10, %v536_v33  ;;  %v2110_v33 = vld [vmem:[#allocation11 + $0x198] sm:$0xff]  }
  0xc5   : > { %807 = vmatpush1.bf16.msra.mxu0 %v1803_v39  ;;  %848 = vmatpush1.bf16.msra.mxu1 %v1805_v40 }
  0xc6   : > { %1881 = vmatprep.subr.bf16.mxu0 %v2063_v37  ;;  %1903 = vmatprep.subr.bf16.mxu1 %v2064_v38  ;;  %v545_v37 = vrot.slane %v2722_v10, %v544_v34  ;;  %v2111_v34 = vld [vmem:[#allocation11 + $0x160] sm:$0xff]  }
  0xc8   : > { %1809 = vmatmul.mubr.msk.bf16.vlgmr.msra.gmra.mrb[4].mxu0 %vm714_vm1, %v479_v20  ;;  %1810 = vmatmul.mubr.msk.bf16.vlgmr.msra.gmra.mrb[4].mxu1 %vm714_vm1, %v479_v20 }
  0xc9   : > { %1882 = vmatpush3.bf16.msra.mxu0 %v2065_v42  ;;  %1904 = vmatpush3.bf16.msra.mxu1 %v2066_v43 }
  0xca   : > { %1883 = vmatprep.subr.bf16.mxu0 %v2067_v44  ;;  %1905 = vmatprep.subr.bf16.mxu1 %v2068_v8 }
  0xcd   : > { %1884 = vmatpush3.bf16.msra.mxu0 %v2069_v45  ;;  %1906 = vmatpush3.bf16.msra.mxu1 %v2070_v46 }
  0xce   : > { %1885 = vmatprep.subr.bf16.mxu0 %v2071_v48  ;;  %1907 = vmatprep.subr.bf16.mxu1 %v2072_v32 }
  0xd1   : > { %1886 = vmatpush3.bf16.msra.mxu0 %v2073_v49  ;;  %1908 = vmatpush3.bf16.msra.mxu1 %v2074_v50 }
  0xd2   : > { %1887 = vmatprep.subr.bf16.mxu0 %v2075_v51  ;;  %1909 = vmatprep.subr.bf16.mxu1 %v2076_v52 }
  0xd5   : > { %1888 = vmatpush3.bf16.msra.mxu0 %v2077_v54  ;;  %1910 = vmatpush3.bf16.msra.mxu1 %v2078_v36 }
  0xd6   : > { %1889 = vmatprep.subr.bf16.mxu0 %v2079_v41  ;;  %1911 = vmatprep.subr.bf16.mxu1 %v2080_v55  ;;  %v532_v55 = vsub.s32 4, %v2706_v63 }
  0xd9   : > { %1890 = vmatpush3.bf16.msra.mxu0 %v2081_v56  ;;  %1912 = vmatpush3.bf16.msra.mxu1 %v2082_v57 }
  0xda   : > { %1891 = vmatprep.subr.bf16.mxu0 %v2083_v58  ;;  %1913 = vmatprep.subr.bf16.mxu1 %v2084_v59 }
  0xdd   : > { %1892 = vmatpush3.bf16.msra.mxu0 %v2085_v47  ;;  %1914 = vmatpush3.bf16.msra.mxu1 %v2086_v53  ;;  %v540_v53 = vsub.s32 6, %v2706_v63 }
  0xde   : > { %1893 = vmatprep.subr.bf16.mxu0 %v2087_v60  ;;  %1915 = vmatprep.subr.bf16.mxu1 %v2088_v61 }
  0xe1   : > { %1894 = vmatpush3.bf16.msra.mxu0 %v2089_v62  ;;  %1916 = vmatpush3.bf16.msra.mxu1 %v2090_v0 }
  0xe2   : > { %1895 = vmatprep.subr.bf16.mxu0 %v2091_v1  ;;  %1917 = vmatprep.subr.bf16.mxu1 %v2092_v2  ;;  %v533_v2 = vrot.slane %v2722_v10, %v532_v55  ;;  %v2123_v55 = vld [vmem:[#allocation11 + $0x178] sm:$0xff]  }
  0xe5   : > { %1896 = vmatpush3.bf16.msra.mxu0 %v2093_v3  ;;  %1918 = vmatpush3.bf16.msra.mxu1 %v2094_v4  ;;  %v541_v3 = vrot.slane %v2722_v10, %v540_v53  ;;  %v2101_v10 = vld [vmem:[#allocation11 + $0x108] sm:$0xff]  }
  0xe6   : > { %1925 = vmatprep.subr.bf16.mxu0 %v2095_v6  ;;  %1947 = vmatprep.subr.bf16.mxu1 %v2096_v7  ;;  %v2097_v7 = vld [vmem:[#allocation11 + $0x100] sm:$0xff]  }
 0x18b   : > { %v752_v17 = vpop.f32.mrb[0].mxu0  ;;  %v793_v18 = vpop.f32.mrb[0].mxu1 }
 0x18c   : > { %v753_v19 = vadd.f32 %v752_v17, %v517_v13  ;;  %v794_v20 = vadd.f32 %v793_v18, %v525_v14  ;;  %v754_v21 = vpop.f32.mrb[1].mxu0  ;;  %v795_v22 = vpop.f32.mrb[1].mxu1  ;;  %v2099_v13 = vld [vmem:[#allocation11 + $0x148] sm:$0xff]   ;;  %v2103_v17 = vld [vmem:[#allocation11 + $0x150] sm:$0xff]  }
 0x18d   : > { %v755_v23 = vadd.f32 %v754_v21, %v521_v15  ;;  %v796_v24 = vadd.f32 %v795_v22, %v529_v16  ;;  %v756_v25 = vpop.f32.mrb[2].mxu0  ;;  %v797_v26 = vpop.f32.mrb[2].mxu1  ;;  %v2100_v14 = vld [vmem:[#allocation11 + $0x1c8] sm:$0xff]   ;;  %v2104_v18 = vld [vmem:[#allocation11 + $0x1d0] sm:$0xff]  }
 0x18e   : > { %v890_v27 = vmul.f32 0.70710677, %v753_v19  ;;  %v892_v28 = vmul.f32 0.70710677, %v794_v20  ;;  %v757_v30 = vpop.f32.mrb[3].mxu0  ;;  %v798_v31 = vpop.f32.mrb[3].mxu1 }
 0x18f   : > { %v891_v29 = vmul.f32 0.70710677, %v755_v23  ;;  %v893_v5 = vmul.f32 0.70710677, %v796_v24  ;;  %v882_v54 = vmul.f32 0.5, %v753_v19  ;;  %v884_v36 = vmul.f32 0.5, %v794_v20 }
 0x190   : > { %2127 = verf.f32 %v890_v27  ;;  %v883_v58 = vmul.f32 0.5, %v755_v23  ;;  %v885_v59 = vmul.f32 0.5, %v796_v24  ;;  %v2102_v16 = vld [vmem:[#allocation11 + $0x188] sm:$0xff]   ;;  %v2105_v23 = vld [vmem:[#allocation11 + $0x110] sm:$0xff]   ;;  %v2107_v27 = vld [vmem:[#allocation11 + $0x158] sm:$0xff]  }
 0x191   : > { %2129 = verf.f32 %v892_v28  ;;  %v2106_v24 = vld [vmem:[#allocation11 + $0x190] sm:$0xff]   ;;  %v2108_v28 = vld [vmem:[#allocation11 + $0x1d8] sm:$0xff]  }
 0x192   : > { %2131 = verf.f32 %v891_v29  ;;  %v2109_v31 = vld [vmem:[#allocation11 + $0x118] sm:$0xff]  }
 0x193   : > { %2133 = verf.f32 %v893_v5 }
 0x19a   : > { %v2128_v38 = vpop.eup %2127 }
 0x19b   : > { %v2130_v39 = vpop.eup %2129  ;;  %v834_v40 = vpop.f32.mrb[4].mxu0  ;;  %v906_v44 = vadd.f32 1.0, %v2128_v38 }
 0x19c   : > { %v875_v42 = vpop.f32.mrb[4].mxu1  ;;  %v2132_v43 = vpop.eup %2131  ;;  %v908_v8 = vadd.f32 1.0, %v2130_v39  ;;  %v2740_v63 = vadd.f32 %v834_v40, %v533_v2  ;;  %v2113_v40 = vld [vmem:[#allocation11 + $0x120] sm:$0xff]  }
 0x19d   : > { %v836_v45 = vpop.f32.mrb[5].mxu0  ;;  %v877_v46 = vpop.f32.mrb[5].mxu1  ;;  %v907_v32 = vadd.f32 1.0, %v2132_v43  ;;  %v914_v60 = vmul.f32 %v906_v44, %v882_v54  ;;  %v2742_v15 = vadd.f32 %v875_v42, %v541_v3  ;;  %v2114_v42 = vld [vmem:[#allocation11 + $0x1a0] sm:$0xff]   ;;  %v2115_v43 = vld [vmem:[#allocation11 + $0x168] sm:$0xff]  }
 0x19e   : > { %v2134_v48 = vpop.eup %2133  ;;  %v837_v49 = vadd.f32 %v836_v45, %v537_v35  ;;  %v878_v50 = vadd.f32 %v877_v46, %v545_v37  ;;  %v838_v51 = vpop.f32.mrb[6].mxu0  ;;  %v916_v61 = vmul.f32 %v908_v8, %v884_v36  ;;  %v894_v19 = vmul.f32 0.70710677, %v2740_v63  ;;  %v2112_v35 = vld [vmem:[#allocation11 + $0x1e0] sm:$0xff]   ;;  %v2116_v44 = vld [vmem:[#allocation11 + $0x1e8] sm:$0xff]  }
 0x19f   : > { %v879_v52 = vpop.f32.mrb[6].mxu1  ;;  %v909_v41 = vadd.f32 1.0, %v2134_v48  ;;  %v839_v56 = vpop.f32.mrb[7].mxu0  ;;  %v915_v0 = vmul.f32 %v907_v32, %v883_v58  ;;  %v922_v11 = vpack.c.bf16 %v914_v60, %v914_v60  ;;  %v896_v22 = vmul.f32 0.70710677, %v2742_v15  ;;  %v2117_v8 = vld [vmem:[#allocation11 + $0x128] sm:$0xff]  }
 0x1a0   : > { %v880_v57 = vpop.f32.mrb[7].mxu1  ;;  %v895_v47 = vmul.f32 0.70710677, %v837_v49  ;;  %v897_v62 = vmul.f32 0.70710677, %v878_v50  ;;  %v924_v12 = vpack.c.bf16 %v916_v61, %v916_v61  ;;  %v887_v20 = vmul.f32 0.5, %v837_v49 }
 0x1a1   : > { %v917_v1 = vmul.f32 %v909_v41, %v885_v59  ;;  %v923_v4 = vpack.c.bf16 %v915_v0, %v915_v0  ;;  %v889_v26 = vmul.f32 0.5, %v878_v50  ;;  %v2118_v45 = vld [vmem:[#allocation11 + $0x1a8] sm:$0xff]   ;;  %v2119_v48 = vld [vmem:[#allocation11 + $0x170] sm:$0xff]   ;;  %v886_v52 = vmul.f32 0.5, %v2740_v63  ;;  %v2124_v56 = vld [vmem:[#allocation11 + $0x1f8] sm:$0xff]  }
 0x1a2   : > { %2135 = verf.f32 %v895_v47  ;;  %v2120_v32 = vld [vmem:[#allocation11 + $0x1f0] sm:$0xff]   ;;  %v888_v36 = vmul.f32 0.5, %v2742_v15  ;;  %v2125_v57 = vld [vmem:[#allocation11 + $0x138] sm:$0xff]   ;;  %v1811_v0 = vld [vmem:[%s2806_s6] ss:$0 sm:$0xff] }
 0x1a3   : > { %2137 = verf.f32 %v897_v62  ;;  %v925_v6 = vpack.c.bf16 %v917_v1, %v917_v1  ;;  %1481 = vmatprep.mubr.bf16.mxu0 %v923_v4  ;;  %v2121_v50 = vld [vmem:[#allocation11 + $0x130] sm:$0xff]   ;;  %v2126_v58 = vld [vmem:[#allocation11 + $0x1b8] sm:$0xff]  }
 0x1a4   : > { %1482 = vmatmul.mubr.bf16.vlgmr.msra.gmra.mrb[8].mxu0 %v922_v11  ;;  %2139 = verf.f32 %v894_v19  ;;  %v2122_v51 = vld [vmem:[#allocation11 + $0x1b0] sm:$0xff]  }
 0x1a5   : > { %1521 = vmatprep.mubr.bf16.mxu1 %v925_v6  ;;  %1926 = vmatpush3.bf16.msra.mxu0 %v2097_v7  ;;  %2141 = verf.f32 %v896_v22 }
 0x1a6   : > { %1522 = vmatmul.mubr.bf16.vlgmr.msra.gmra.mrb[8].mxu1 %v924_v12  ;;  %1927 = vmatprep.subr.bf16.mxu0 %v2099_v13 }
 0x1a7   : > { %1948 = vmatpush3.bf16.msra.mxu1 %v2098_v9 }
 0x1a8   : > { %1949 = vmatprep.subr.bf16.mxu1 %v2100_v14 }
 0x1a9   : > { %1928 = vmatpush3.bf16.msra.mxu0 %v2101_v10 }
 0x1aa   : > { %1929 = vmatprep.subr.bf16.mxu0 %v2103_v17 }
 0x1ab   : > { %1950 = vmatpush3.bf16.msra.mxu1 %v2102_v16 }
 0x1ac   : > { %v2136_v21 = vpop.eup %2135  ;;  %1951 = vmatprep.subr.bf16.mxu1 %v2104_v18 }
 0x1ad   : > { %v911_v25 = vadd.f32 1.0, %v2136_v21  ;;  %v2138_v29 = vpop.eup %2137  ;;  %1930 = vmatpush3.bf16.msra.mxu0 %v2105_v23 }
 0x1ae   : > { %v913_v5 = vadd.f32 1.0, %v2138_v29  ;;  %1931 = vmatprep.subr.bf16.mxu0 %v2107_v27  ;;  %v2140_v46 = vpop.eup %2139 }
 0x1af   : > { %v919_v30 = vmul.f32 %v911_v25, %v887_v20  ;;  %1952 = vmatpush3.bf16.msra.mxu1 %v2106_v24  ;;  %v2142_v49 = vpop.eup %2141  ;;  %v910_v54 = vadd.f32 1.0, %v2140_v46 }
 0x1b0   : > { %1953 = vmatprep.subr.bf16.mxu1 %v2108_v28  ;;  %v921_v38 = vmul.f32 %v913_v5, %v889_v26  ;;  %v912_v41 = vadd.f32 1.0, %v2142_v49 }
 0x1b1   : > { %v927_v37 = vpack.c.bf16 %v919_v30, %v919_v30  ;;  %1932 = vmatpush3.bf16.msra.mxu0 %v2109_v31  ;;  %v918_v59 = vmul.f32 %v910_v54, %v886_v52 }
 0x1b2   : > { %v929_v39 = vpack.c.bf16 %v921_v38, %v921_v38  ;;  %1933 = vmatprep.subr.bf16.mxu0 %v2111_v34  ;;  %v920_v47 = vmul.f32 %v912_v41, %v888_v36 }
 0x1b3   : > { %1561 = vmatprep.mubr.bf16.mxu0 %v927_v37  ;;  %1954 = vmatpush3.bf16.msra.mxu1 %v2110_v33  ;;  %v926_v53 = vpack.c.bf16 %v918_v59, %v918_v59 }
 0x1b4   : > { %1955 = vmatprep.subr.bf16.mxu1 %v2112_v35  ;;  %1601 = vmatprep.mubr.bf16.mxu1 %v929_v39  ;;  %v928_v60 = vpack.c.bf16 %v920_v47, %v920_v47 }
 0x1b5   : > { %1934 = vmatpush3.bf16.msra.mxu0 %v2113_v40 }
 0x1b6   : > { %1935 = vmatprep.subr.bf16.mxu0 %v2115_v43 }
 0x1b7   : > { %1956 = vmatpush3.bf16.msra.mxu1 %v2114_v42 }
 0x1b8   : > { %1957 = vmatprep.subr.bf16.mxu1 %v2116_v44 }
 0x1b9   : > { %1936 = vmatpush3.bf16.msra.mxu0 %v2117_v8 }
 0x1ba   : > { %1937 = vmatprep.subr.bf16.mxu0 %v2119_v48 }
 0x1bb   : > { %1958 = vmatpush3.bf16.msra.mxu1 %v2118_v45 }
 0x1bc   : > { %1959 = vmatprep.subr.bf16.mxu1 %v2120_v32 }
 0x1bd   : > { %1938 = vmatpush3.bf16.msra.mxu0 %v2121_v50 }
 0x1be   : > { %1939 = vmatprep.subr.bf16.mxu0 %v2123_v55 }
 0x1bf   : > { %1960 = vmatpush3.bf16.msra.mxu1 %v2122_v51 }
 0x1c0   : > { %1961 = vmatprep.subr.bf16.mxu1 %v2124_v56 }
 0x1c1   : > { %1940 = vmatpush3.bf16.msra.mxu0 %v2125_v57 }
 0x1c3   : > { %1962 = vmatpush3.bf16.msra.mxu1 %v2126_v58 }
 0x1c4   : > { %1562 = vmatmul.mubr.bf16.vlgmr.msra.gmra.mrb[12].mxu0 %v926_v53 }
 0x1c6   : > { %1602 = vmatmul.mubr.bf16.vlgmr.msra.gmra.mrb[12].mxu1 %v928_v60 }
 0x277   : > { %v1897_v61 = vpop.f32.mrb[8].mxu0 }
 0x278   : > { %v1898_v1 = vpop.f32.mrb[9].mxu0 }
 0x279   : > { %v1919_v62 = vpop.f32.mrb[8].mxu1  ;;  %v1899_v3 = vadd.f32 %v1898_v1, %v1897_v61  ;;  %v1900_v6 = vpop.f32.mrb[10].mxu0 }
 0x27a   : > { %v1920_v2 = vpop.f32.mrb[9].mxu1  ;;  %v1901_v9 = vpop.f32.mrb[11].mxu0 }
 0x27b   : > { %v1921_v4 = vadd.f32 %v1920_v2, %v1919_v62  ;;  %v1922_v7 = vpop.f32.mrb[10].mxu1  ;;  %v1484_v12 = vadd.f32 %v1899_v3, %v1811_v0 }
 0x27c   : > { %v1923_v11 = vpop.f32.mrb[11].mxu1 }
 0x27d   : > { %v1524_v13 = vadd.f32 %v1921_v4, %v1484_v12 }
 0x297   : > { %v1941_v14 = vpop.f32.mrb[12].mxu0 }
 0x298   : > { %v1942_v15 = vpop.f32.mrb[13].mxu0 }
 0x299   : > { %v1963_v63 = vpop.f32.mrb[12].mxu1  ;;  %v1943_v16 = vadd.f32 %v1942_v15, %v1941_v14  ;;  %v1944_v18 = vpop.f32.mrb[14].mxu0 }
 0x29a   : > { %v1964_v10 = vpop.f32.mrb[13].mxu1  ;;  %v1945_v20 = vpop.f32.mrb[15].mxu0 }
 0x29b   : > { %v1965_v17 = vadd.f32 %v1964_v10, %v1963_v63  ;;  %v1966_v19 = vpop.f32.mrb[14].mxu1  ;;  %v1564_v22 = vadd.f32 %v1943_v16, %v1524_v13 }
 0x29c   : > { %v1967_v21 = vpop.f32.mrb[15].mxu1 }
 0x29d   : > { %v1604_v23 = vadd.f32 %v1965_v17, %v1564_v22 }
 0x29f   : > { %1609 = vst [vmem:[%s352_s29] sm:$0x3] %v1604_v23 }
 0x2a0   : > { %2272 = shalt.err (!%p2269_p3)
}
 0x2a1   : > { %s2273_s20 = scalar_lea.hbm %s2756_s19, 32  ;;  %s2277_s9 = scalar_lea.hbm %s2807_s7, 64 }
 0x2a2   : > { %p2274_p11 = scmp.ne.s32.totalorder %s2756_s19, %s2273_s20  ;;  %p2278_p6 = scmp.lt.u32.totalorder %s2756_s19, %s2807_s7 }
 0x2a3   : > { %p2279_p5 = scmp.lt.u32.totalorder %s2277_s9, %s2273_s20  ;;  %p2281_p12 = scmp.lt.u32.totalorder %s2273_s20, %s2756_s19 }
 0x2a4   : > { %p2275_p8 = pnand %p2274_p11, %p2536_p7 }
 0x2a5   : > { %p2280_p9 = por %p2279_p5, %p2278_p6 }
 0x2a6   : > { %p2276_p13 = pneg %p2275_p8 }
 0x2a7   : > { %p2282_p10 = por %p2281_p12, %p2280_p9 }
 0x2a9   : > { %p2283_p1 = pnand %p2282_p10, %p2276_p13 }
 0x2ab   : > { %2286 = shalt.err (!%p2283_p1)
}
 0x2ac   : > { %1987 = dma.vmem_to_hbm [thread:$0]  (%p2536_p7), %s2758_s11, 32, %s2756_s19, %s1611_s14  }
 0x2ad PF: > { %s1636_s23 = sand.u32 1, %s2325_s24   ;;  %p2827_p2 = scmp.ne.s32.totalorder %s2812_s8, 0 }
 0x2ae   : > { %p2828_p4 = scmp.ge.s32.totalorder %s2337_s27, 2  ;;  %s1637_s13 = scalar_lea.sflag [#allocation4], %s1636_s23 }
 0x2b0   : > { %p2007_p0 = pnand %p2828_p4, %p2827_p2 }
 0x2b2   : > { %2320 = dma.done.wait (!%p2007_p0), %s1637_s13, 32  }
 0x2b3   : > { %2322 = vsyncadd (!%p2007_p0), %s1637_s13, 4294967264  ;;  %p23_p3 = scmp.ge.s32.totalorder %s2523_s10, 4   ;;  %s2829_s24 = smov %s2329_s25 }
 0x2b4   : > { %s2830_s25 = smov %s2333_s26  ;;  %s2831_s26 = smov %s2532_s16 }
 0x2b5   : > { %s2832_s27 = smov %s2523_s10  ;;  %25 = sbr.rel (!%p23_p3) target bundleno = 8 (0x8), region = 125 }
 0x2bc   :  { %1642 = vsyncpa [#allocation3], 1 }
 0x2bd   :  { %1644 = vsyncpa [#allocation3 + $0x1], 1 }
 0x2be   :  { %1645 = vsyncpa [#allocation10], 1 }
 0x2bf   :  { %1646 = vsyncpa [#allocation4], 1 }
 0x2c0   :  { %1648 = vsyncpa [#allocation4 + $0x1], 1 }
 0x2c1   :  { %1649 = vsyncpa [#allocation5], 1 }
 0x2c2   :  { %1651 = vsyncpa [#allocation5 + $0x1], 1 }
 0x2c3   :  { %1652 = vsyncpa [#allocation8], 1 }

</bundles_post_ra>
